<compile_context>
chip_gen: v5e
topology: v5e:2x2
jax: 0.10.0
libtpu: 0.0.40
codegen_flags: <defaults>
</compile_context>

<pallas_src>
import jax
import jax.numpy as jnp
from jax.experimental import pallas as pl
from jax.experimental.pallas import tpu as pltpu

HI = jax.lax.Precision.HIGHEST  # used only by the pure-JAX reference


# -----------------------------------------------------------------------------
# Fused kernel: all CPE layers, one batch block per grid step.
# grid = (num_batch_blocks, num_layers); the layer axis is "arbitrary" and the
# activation is carried across layers in the VMEM scratch `cur_ref`.
# Data layout: (C, N) with N = bb*T on lanes, channels on sublanes.
# -----------------------------------------------------------------------------
def _cpe_block_kernel(x_ref, dis_ref, mask_ref,
                      w1t_ref, b1_ref, w2t_ref, b2_ref, w3t_ref, b3_ref,
                      wvt_ref, bv_ref,
                      out_ref, cur_ref):
    n_layers = pl.num_programs(1)
    layer = pl.program_id(1)

    C, N = x_ref.shape                       # channels, bb * T lanes
    K = dis_ref.shape[1]                     # window size
    G = w3t_ref.shape[1]                     # groups
    hd = C // G
    pad = (K - 1) // 2

    # Layer 0: load this batch block into the f32 activation carry.
    @pl.when(layer == 0)
    def _():
        cur_ref[...] = x_ref[...].astype(jnp.float32)

    x_in = cur_ref[...]                      # (C, N) f32

    # Resident per-layer weights (stacked on a leading L axis, DMA'd once).
    w1t = w1t_ref[layer]                     # (H1, 2)  f32  (VPU-only layer)
    b1c = b1_ref[layer]                      # (H1, 1)  f32
    w2t = w2t_ref[layer]                     # (H2, H1) bf16
    b2c = b2_ref[layer]                      # (H2, 1)  f32
    w3t = w3t_ref[layer]                     # (G, H2)  bf16
    b3c = b3_ref[layer]                      # (G, 1)   f32
    wvt = wvt_ref[layer]                     # (C, C)   bf16 (v half of kv_func)
    bvc = bv_ref[layer]                      # (C, 1)   f32

    H1 = w1t.shape[0]

    d = dis_ref[...]                         # (2, K, N) f32
    mask = mask_ref[...]                     # (K, 1, N) f32 window validity

    # ---- attention MLP layer 1 as a VPU outer product (contraction dim = 2;
    #      the MXU would run at ~1% utilization).  Weight-column broadcasts
    #      are hoisted out of the K loop (JAX does not CSE broadcast_in_dim).
    a0 = jnp.broadcast_to(w1t[:, 0:1], (H1, N))
    a1 = jnp.broadcast_to(w1t[:, 1:2], (H1, N))
    b1b = jnp.broadcast_to(b1c, (H1, N))

    # ---- attention logits per window tap: 2 -> H1 -> ReLU -> H2 -> ReLU -> G
    #      (dropout layers are identity in eval mode)
    logits = []
    for j in range(K):
        d0 = d[0:1, j, :]                    # (1, N)
        d1 = d[1:2, j, :]
        h = jnp.maximum(a0 * d0 + a1 * d1 + b1b, 0.0)                  # (H1, N)
        h = jnp.dot(w2t, h.astype(jnp.bfloat16),
                    preferred_element_type=jnp.float32) + b2c          # (H2, N)
        h = jnp.maximum(h, 0.0)
        lg = jnp.dot(w3t, h.astype(jnp.bfloat16),
                     preferred_element_type=jnp.float32) + b3c         # (G, N)
        logits.append(lg)

    # ---- softmax over the K window taps (K tiny & static) ------------------
    m = logits[0]
    for j in range(1, K):
        m = jnp.maximum(m, logits[j])
    p = [jnp.exp(lg - m) for lg in logits]
    denom = p[0]
    for j in range(1, K):
        denom = denom + p[j]
    inv = 1.0 / denom                        # exact: keeps the bias fold-back exact

    # ---- v projection WITHOUT bias (bias added back once after the window
    #      sum -- see header note).  bf16 MXU inputs, f32 accumulation. -------
    v = jnp.dot(wvt, x_in.astype(jnp.bfloat16),
                preferred_element_type=jnp.float32)                    # (C, N)

    # ---- windowed, head-grouped weighted sum over the K neighbours.  The
    #      group->channel expansion is a per-group sublane broadcast. ---------
    acc_g = [jnp.zeros((hd, N), jnp.float32) for _ in range(G)]
    for j in range(K):
        s = j - pad
        # Shift along the lane (time) axis; wrapped lanes (batch boundaries,
        # block edges) are killed by the window mask folded into the weights.
        # TODO(synk): pltpu.roll(axis=-1) would route this shift to the XLU slot.
        vs = v if s == 0 else jnp.roll(v, -s, axis=1)
        aw = (p[j] * inv) * mask[j]                                    # (G, N)
        for g in range(G):
            acc_g[g] = acc_g[g] + aw[g:g + 1, :] * vs[g * hd:(g + 1) * hd, :]
    acc = jnp.concatenate(acc_g, axis=0) + bvc                         # (C, N)

    cur_ref[...] = acc                        # carry to the next layer

    # Last layer: fuse the CPE_Block residual add and write the output block.
    @pl.when(layer == n_layers - 1)
    def _():
        out_ref[...] = (acc + x_ref[...]).astype(out_ref.dtype)


# -----------------------------------------------------------------------------
# Batch blocking heuristic.
# -----------------------------------------------------------------------------
def _pick_batch_block(b, t):
    # Lane extent of a block must be a multiple of 128 (or cover the full
    # batch).  Prefer >=2 blocks (v7x has 2 TensorCores) and a lane extent
    # that amortizes the ~0.35us per-step overhead while keeping per-block
    # intermediates comfortably inside v7x's 64 MiB VMEM.
    cands = [d for d in range(1, b + 1) if b % d == 0 and (d * t) % 128 == 0]
    if not cands:
        return b                                   # single full-batch block
    cands = [d for d in cands if d * t <= 8192] or [cands[0]]
    pool = [d for d in cands if b // d >= 2] or cands
    big = [d for d in pool if d * t >= 512]
    return min(big) if big else max(pool)


# -----------------------------------------------------------------------------
# Wrapper: layout plumbing + single fused pallas_call.
# -----------------------------------------------------------------------------
def cpe_block_pallas(x_nchw, dis, params, K, G):
    b, c, t, w = x_nchw.shape
    assert w == 1, "trajectory CPE expects width == 1"
    assert c % G == 0
    L = len(params)
    hd = c // G
    pad = (K - 1) // 2
    # TODO(synk): stride != 1 of F.unfold is not supported (CPE_Block uses stride=1).

    # ---- transposed layout: channels on sublanes, (batch*time) on lanes ----
    x_k = jnp.transpose(x_nchw[:, :, :, 0], (1, 0, 2)).reshape(c, b * t)     # (C, B*T)
    dis_k = jnp.transpose(dis[:, :t], (3, 2, 0, 1)).reshape(2, K, b * t)     # (2, K, B*T)

    # window-validity mask per tap, folded into the attention weights in-kernel
    t_idx = jnp.tile(jnp.arange(t, dtype=jnp.int32), b)                      # (B*T,)
    rows = []
    for j in range(K):
        s = j - pad
        if s > 0:
            rows.append(t_idx < t - s)
        elif s < 0:
            rows.append(t_idx >= -s)
        else:
            rows.append(jnp.ones((b * t,), bool))
    win_mask = jnp.stack(rows).astype(jnp.float32)[:, None, :]               # (K, 1, B*T)

    # per-layer weights stacked on a leading layer axis, pre-transposed for the
    # (C, N) layout; matmul weights pre-cast to bf16 (f32 accumulation in-kernel),
    # biases and the VPU-only first MLP layer stay f32.  Only the v half of
    # kv_func is kept (the k half and `scale` are dead code in the forward).
    w1t = jnp.stack([p[0].T for p in params])                                # (L, H1, 2)
    b1 = jnp.stack([p[1] for p in params])[:, :, None]                       # (L, H1, 1)
    w2t = jnp.stack([p[2].T for p in params]).astype(jnp.bfloat16)           # (L, H2, H1)
    b2 = jnp.stack([p[3] for p in params])[:, :, None]                       # (L, H2, 1)
    w3t = jnp.stack([p[4].T for p in params]).astype(jnp.bfloat16)           # (L, G, H2)
    b3 = jnp.stack([p[5] for p in params])[:, :, None]                       # (L, G, 1)
    wvt = jnp.stack([p[6][:, c:].T for p in params]).astype(jnp.bfloat16)    # (L, C, C)
    bv = jnp.stack([p[7][c:] for p in params])[:, :, None]                   # (L, C, 1)
    H1, H2 = int(w1t.shape[1]), int(w2t.shape[1])

    bb = _pick_batch_block(b, t)
    nb = b // bb
    N = bb * t

    # advisory cost estimate for the XLA scheduler
    flops = L * b * t * (K * (4 * H1 + 2 * H1 * H2 + 2 * H2 * G + 2 * c + 4 * G)
                         + 2 * c * c + 2 * c)
    transcendentals = L * b * t * G * (K + 1)
    weight_bytes = 4 * L * (2 * H1 + H1 + H1 * H2 + H2 + H2 * G + G + c * c + c)
    bytes_accessed = (2 * c + 2 * K + K) * b * t * 4 + weight_bytes

    out_cn = pl.pallas_call(
        _cpe_block_kernel,
        out_shape=jax.ShapeDtypeStruct((c, b * t), jnp.float32),
        grid=(nb, L),
        in_specs=[
            pl.BlockSpec((c, N), lambda i, l: (0, i)),               # x (transposed)
            pl.BlockSpec((2, K, N), lambda i, l: (0, 0, i)),         # dis (lane-dense)
            pl.BlockSpec((K, 1, N), lambda i, l: (0, 0, i)),         # window mask
            pl.BlockSpec((L, H1, 2), lambda i, l: (0, 0, 0)),        # w1^T  (resident)
            pl.BlockSpec((L, H1, 1), lambda i, l: (0, 0, 0)),        # b1    (resident)
            pl.BlockSpec((L, H2, H1), lambda i, l: (0, 0, 0)),       # w2^T  (resident)
            pl.BlockSpec((L, H2, 1), lambda i, l: (0, 0, 0)),        # b2    (resident)
            pl.BlockSpec((L, G, H2), lambda i, l: (0, 0, 0)),        # w3^T  (resident)
            pl.BlockSpec((L, G, 1), lambda i, l: (0, 0, 0)),         # b3    (resident)
            pl.BlockSpec((L, c, c), lambda i, l: (0, 0, 0)),         # wv^T  (resident)
            pl.BlockSpec((L, c, 1), lambda i, l: (0, 0, 0)),         # bv    (resident)
        ],
        out_specs=pl.BlockSpec((c, N), lambda i, l: (0, i)),
        scratch_shapes=[pltpu.VMEM((c, N), jnp.float32)],            # layer carry
        compiler_params=pltpu.CompilerParams(
            dimension_semantics=("parallel", "arbitrary"),
            vmem_limit_bytes=48 * 1024 * 1024),
        cost_estimate=pl.CostEstimate(flops=flops,
                                      transcendentals=transcendentals,
                                      bytes_accessed=bytes_accessed),
    )(x_k, dis_k, win_mask, w1t, b1, w2t, b2, w3t, b3, wvt, bv)

    # residual already fused in the kernel; back to NCHW (B, C, T, 1)
    return jnp.transpose(out_cn.reshape(c, b, t), (1, 0, 2))[:, :, :, None]


# -----------------------------------------------------------------------------
# Pure-JAX reference (direct port of the PyTorch forward, eval mode, f32)
# -----------------------------------------------------------------------------
def _cpe_ref(x_nchw, dis, p, K, G):
    w1, b1, w2, b2, w3, b3, wkv, bkv = p
    b, c, t, w = x_nchw.shape
    hd = c // G
    d = dis[:, :t]                                                       # (b,t,K,2)
    h = jax.nn.relu(jnp.matmul(d, w1, precision=HI) + b1)
    h = jax.nn.relu(jnp.matmul(h, w2, precision=HI) + b2)
    a = jnp.matmul(h, w3, precision=HI) + b3                             # (b,t,K,G)
    a = a.reshape(-1, K, G)
    a = jnp.transpose(a, (0, 2, 1))[:, :, None, :]                       # (b*t,G,1,K)
    pad = (K - 1) // 2
    xp = jnp.pad(x_nchw, ((0, 0), (0, 0), (pad, pad), (0, 0)))
    cols = jnp.stack([xp[:, :, j:j + t, :] for j in range(K)], axis=2)   # unfold
    cols = cols.reshape(b, c, K, t * w)
    kmat = jnp.transpose(cols, (0, 3, 2, 1)).reshape(-1, K, c)
    kv = jnp.matmul(kmat, wkv, precision=HI) + bkv
    kv = kv.reshape(b * t * w, K, 2, G, hd)
    kv = jnp.transpose(kv, (2, 0, 3, 1, 4))
    v = kv[1]                                                            # (N,G,K,hd)
    attn = jax.nn.softmax(a, axis=-1)
    o = jnp.matmul(attn, v, precision=HI)                                # (N,G,1,hd)
    o = jnp.transpose(o, (0, 2, 1, 3)).reshape(b * t * w, 1, c)
    o = o.reshape(b, t, w, c)
    return jnp.transpose(o, (0, 3, 1, 2))


def cpe_block_ref(x_nchw, dis, params, K, G):
    cur = x_nchw
    for p in params:
        cur = _cpe_ref(cur, dis, p, K, G)
    return cur + x_nchw


# -----------------------------------------------------------------------------
def _init_linear(key, fan_in, fan_out):
    k1, k2 = jax.random.split(key)
    bound = 1.0 / jnp.sqrt(jnp.float32(fan_in))
    W = jax.random.uniform(k1, (fan_in, fan_out), jnp.float32, -bound, bound)
    b = jax.random.uniform(k2, (fan_out,), jnp.float32, -bound, bound)
    return W, b


if __name__ == "__main__":
    B, C, T, W = 2, 32, 128, 1       # x: (B, C, T, 1) -- NCHW with width 1
    K, G = 3, 4                      # kernel_size, groups
    CPE_LAYERS = 2                   # exercise the fused multi-layer path

    key = jax.random.PRNGKey(0)
    kx, kd, kp = jax.random.split(key, 3)
    x = jax.random.normal(kx, (B, C, T, W), jnp.float32)
    dis = jax.random.normal(kd, (B, T + 4, K, 2), jnp.float32)  # sliced to T

    params = []
    pk = kp
    for _ in range(CPE_LAYERS):
        pk, k1, k2, k3, k4 = jax.random.split(pk, 5)
        w1, b1 = _init_linear(k1, 2, 64)
        w2, b2 = _init_linear(k2, 64, 128)
        w3, b3 = _init_linear(k3, 128, G)
        wkv, bkv = _init_linear(k4, C, 2 * C)
        params.append((w1, b1, w2, b2, w3, b3, wkv, bkv))

    out = cpe_block_pallas(x, dis, params, K, G)
    out = jax.block_until_ready(out)

    ref = cpe_block_ref(x, dis, params, K, G)
    assert out.shape == (B, C, T, W)
    err = float(jnp.max(jnp.abs(out - ref)))
    # tolerance covers the bf16 MXU inputs (f32 accumulation); with f32
    # matmuls the kernel matches the f32 reference to ~1e-6
    assert err < 5e-2, f"max abs err {err}"
    print("KERNEL_OK")
</pallas_src>

<mosaic_0001>
module attributes {stable_mosaic.version = 11 : i64} {
  func.func @_cpe_block_kernel(%arg0: i32, %arg1: i32, %arg2: memref<32x128xf32, #tpu.memory_space<vmem>>, %arg3: memref<2x3x128xf32, #tpu.memory_space<vmem>>, %arg4: memref<3x1x128xf32, #tpu.memory_space<vmem>>, %arg5: memref<2x64x2xf32, #tpu.memory_space<vmem>>, %arg6: memref<2x64x1xf32, #tpu.memory_space<vmem>>, %arg7: memref<2x128x64xbf16, #tpu.memory_space<vmem>>, %arg8: memref<2x128x1xf32, #tpu.memory_space<vmem>>, %arg9: memref<2x4x128xbf16, #tpu.memory_space<vmem>>, %arg10: memref<2x4x1xf32, #tpu.memory_space<vmem>>, %arg11: memref<2x32x32xbf16, #tpu.memory_space<vmem>>, %arg12: memref<2x32x1xf32, #tpu.memory_space<vmem>>, %arg13: memref<32x128xf32, #tpu.memory_space<vmem>>, %arg14: memref<32x128xf32, #tpu.memory_space<vmem>>) attributes {dimension_semantics = [#tpu.dimension_semantics<parallel>, #tpu.dimension_semantics<arbitrary>], iteration_bounds = array<i64: 2, 2>, scalar_prefetch = 0 : i64, scratch_operands = 1 : i64, tpu.core_type = #tpu.core_type<tc>, window_params = [{transform_indices = @transform_0, window_bounds = array<i64: 32, 128>}, {transform_indices = @transform_1, window_bounds = array<i64: 2, 3, 128>}, {transform_indices = @transform_2, window_bounds = array<i64: 3, 1, 128>}, {pipeline_mode = #tpu.pipeline_mode<synchronous>, transform_indices = @transform_3, window_bounds = array<i64: 2, 64, 2>}, {pipeline_mode = #tpu.pipeline_mode<synchronous>, transform_indices = @transform_4, window_bounds = array<i64: 2, 64, 1>}, {pipeline_mode = #tpu.pipeline_mode<synchronous>, transform_indices = @transform_5, window_bounds = array<i64: 2, 128, 64>}, {pipeline_mode = #tpu.pipeline_mode<synchronous>, transform_indices = @transform_6, window_bounds = array<i64: 2, 128, 1>}, {pipeline_mode = #tpu.pipeline_mode<synchronous>, transform_indices = @transform_7, window_bounds = array<i64: 2, 4, 128>}, {pipeline_mode = #tpu.pipeline_mode<synchronous>, transform_indices = @transform_8, window_bounds = array<i64: 2, 4, 1>}, {pipeline_mode = #tpu.pipeline_mode<synchronous>, transform_indices = @transform_9, window_bounds = array<i64: 2, 32, 32>}, {pipeline_mode = #tpu.pipeline_mode<synchronous>, transform_indices = @transform_10, window_bounds = array<i64: 2, 32, 1>}, {transform_indices = @transform_11, window_bounds = array<i64: 32, 128>}]} {
    %c0_i32 = arith.constant 0 : i32
    %0 = arith.cmpi eq, %arg1, %c0_i32 : i32
    %1 = arith.extui %0 : i1 to i32
    %c0_i32_0 = arith.constant 0 : i32
    %2 = arith.cmpi ne, %1, %c0_i32_0 : i32
    scf.if %2 {
      %c0_44 = arith.constant 0 : index
      %c0_45 = arith.constant 0 : index
      %210 = vector.load %arg2[%c0_44, %c0_45] : memref<32x128xf32, #tpu.memory_space<vmem>>, vector<32x128xf32>
      %c0_46 = arith.constant 0 : index
      %c0_47 = arith.constant 0 : index
      %211 = vector.load %arg14[%c0_46, %c0_47] : memref<32x128xf32, #tpu.memory_space<vmem>>, vector<32x128xf32>
      tpu.vector_store %arg14[%c0_46, %c0_47], %210 {strides = array<i32>} : memref<32x128xf32, #tpu.memory_space<vmem>>, vector<32x128xf32>,
    } else {
    }
    %c0 = arith.constant 0 : index
    %c0_1 = arith.constant 0 : index
    %3 = vector.load %arg14[%c0, %c0_1] : memref<32x128xf32, #tpu.memory_space<vmem>>, vector<32x128xf32>
    %4 = arith.index_cast %arg1 : i32 to index
    %c0_2 = arith.constant 0 : index
    %c0_3 = arith.constant 0 : index
    %5 = vector.load %arg5[%4, %c0_2, %c0_3] : memref<2x64x2xf32, #tpu.memory_space<vmem>>, vector<1x64x2xf32>
    %6 = vector.shape_cast %5 : vector<1x64x2xf32> to vector<64x2xf32>
    %7 = arith.index_cast %arg1 : i32 to index
    %c0_4 = arith.constant 0 : index
    %c0_5 = arith.constant 0 : index
    %8 = vector.load %arg6[%7, %c0_4, %c0_5] : memref<2x64x1xf32, #tpu.memory_space<vmem>>, vector<1x64x1xf32>
    %9 = vector.shape_cast %8 : vector<1x64x1xf32> to vector<64x1xf32>
    %10 = arith.index_cast %arg1 : i32 to index
    %c0_6 = arith.constant 0 : index
    %c0_7 = arith.constant 0 : index
    %11 = vector.load %arg7[%10, %c0_6, %c0_7] : memref<2x128x64xbf16, #tpu.memory_space<vmem>>, vector<1x128x64xbf16>
    %12 = vector.shape_cast %11 : vector<1x128x64xbf16> to vector<128x64xbf16>
    %13 = arith.index_cast %arg1 : i32 to index
    %c0_8 = arith.constant 0 : index
    %c0_9 = arith.constant 0 : index
    %14 = vector.load %arg8[%13, %c0_8, %c0_9] : memref<2x128x1xf32, #tpu.memory_space<vmem>>, vector<1x128x1xf32>
    %15 = vector.shape_cast %14 : vector<1x128x1xf32> to vector<128x1xf32>
    %16 = arith.index_cast %arg1 : i32 to index
    %c0_10 = arith.constant 0 : index
    %c0_11 = arith.constant 0 : index
    %17 = vector.load %arg9[%16, %c0_10, %c0_11] : memref<2x4x128xbf16, #tpu.memory_space<vmem>>, vector<1x4x128xbf16>
    %18 = vector.shape_cast %17 : vector<1x4x128xbf16> to vector<4x128xbf16>
    %19 = arith.index_cast %arg1 : i32 to index
    %c0_12 = arith.constant 0 : index
    %c0_13 = arith.constant 0 : index
    %20 = vector.load %arg10[%19, %c0_12, %c0_13] : memref<2x4x1xf32, #tpu.memory_space<vmem>>, vector<1x4x1xf32>
    %21 = vector.shape_cast %20 : vector<1x4x1xf32> to vector<4x1xf32>
    %22 = arith.index_cast %arg1 : i32 to index
    %c0_14 = arith.constant 0 : index
    %c0_15 = arith.constant 0 : index
    %23 = vector.load %arg11[%22, %c0_14, %c0_15] : memref<2x32x32xbf16, #tpu.memory_space<vmem>>, vector<1x32x32xbf16>
    %24 = vector.shape_cast %23 : vector<1x32x32xbf16> to vector<32x32xbf16>
    %25 = arith.index_cast %arg1 : i32 to index
    %c0_16 = arith.constant 0 : index
    %c0_17 = arith.constant 0 : index
    %26 = vector.load %arg12[%25, %c0_16, %c0_17] : memref<2x32x1xf32, #tpu.memory_space<vmem>>, vector<1x32x1xf32>
    %27 = vector.shape_cast %26 : vector<1x32x1xf32> to vector<32x1xf32>
    %c0_18 = arith.constant 0 : index
    %c0_19 = arith.constant 0 : index
    %c0_20 = arith.constant 0 : index
    %28 = vector.load %arg3[%c0_18, %c0_19, %c0_20] : memref<2x3x128xf32, #tpu.memory_space<vmem>>, vector<2x3x128xf32>
    %c0_21 = arith.constant 0 : index
    %c0_22 = arith.constant 0 : index
    %c0_23 = arith.constant 0 : index
    %29 = vector.load %arg4[%c0_21, %c0_22, %c0_23] : memref<3x1x128xf32, #tpu.memory_space<vmem>>, vector<3x1x128xf32>
    %30 = vector.extract_strided_slice %6 {offsets = [0, 0], sizes = [64, 1], strides = [1, 1]} : vector<64x2xf32> to vector<64x1xf32>
    %31 = vector.shape_cast %30 : vector<64x1xf32> to vector<64x1xf32>
    %32 = vector.broadcast %31 : vector<64x1xf32> to vector<64x128xf32>
    %33 = vector.extract_strided_slice %6 {offsets = [0, 1], sizes = [64, 1], strides = [1, 1]} : vector<64x2xf32> to vector<64x1xf32>
    %34 = vector.shape_cast %33 : vector<64x1xf32> to vector<64x1xf32>
    %35 = vector.broadcast %34 : vector<64x1xf32> to vector<64x128xf32>
    %36 = vector.shape_cast %9 : vector<64x1xf32> to vector<64x1xf32>
    %37 = vector.broadcast %36 : vector<64x1xf32> to vector<64x128xf32>
    %38 = vector.extract_strided_slice %28 {offsets = [0, 0, 0], sizes = [1, 1, 128], strides = [1, 1, 1]} : vector<2x3x128xf32> to vector<1x1x128xf32>
    %39 = vector.shape_cast %38 : vector<1x1x128xf32> to vector<1x128xf32>
    %40 = vector.extract_strided_slice %28 {offsets = [1, 0, 0], sizes = [1, 1, 128], strides = [1, 1, 1]} : vector<2x3x128xf32> to vector<1x1x128xf32>
    %41 = vector.shape_cast %40 : vector<1x1x128xf32> to vector<1x128xf32>
    %42 = vector.broadcast %39 : vector<1x128xf32> to vector<64x128xf32>
    %43 = arith.mulf %32, %42 : vector<64x128xf32>
    %44 = vector.broadcast %41 : vector<1x128xf32> to vector<64x128xf32>
    %45 = arith.mulf %35, %44 : vector<64x128xf32>
    %46 = arith.addf %43, %45 : vector<64x128xf32>
    %47 = arith.addf %46, %37 : vector<64x128xf32>
    %cst = arith.constant 0.000000e+00 : f32
    %48 = vector.broadcast %cst : f32 to vector<64x128xf32>
    %49 = arith.maximumf %47, %48 : vector<64x128xf32>
    %50 = arith.truncf %49 : vector<64x128xf32> to vector<64x128xbf16>
    %cst_24 = arith.constant dense<0.000000e+00> : vector<128x128xf32>
    %51 = tpu.matmul %12, %50, %cst_24 {dimension_numbers = #tpu.dot_dimension_numbers<[1], [0], [0], [1], [0, 0, 1, 1], [], []>} : vector<128x64xbf16>, vector<64x128xbf16>, vector<128x128xf32> -> vector<128x128xf32>
    %52 = vector.broadcast %15 : vector<128x1xf32> to vector<128x128xf32>
    %53 = arith.addf %51, %52 : vector<128x128xf32>
    %cst_25 = arith.constant 0.000000e+00 : f32
    %54 = vector.broadcast %cst_25 : f32 to vector<128x128xf32>
    %55 = arith.maximumf %53, %54 : vector<128x128xf32>
    %56 = arith.truncf %55 : vector<128x128xf32> to vector<128x128xbf16>
    %cst_26 = arith.constant dense<0.000000e+00> : vector<4x128xf32>
    %57 = tpu.matmul %18, %56, %cst_26 {dimension_numbers = #tpu.dot_dimension_numbers<[1], [0], [0], [1], [0, 0, 1, 1], [], []>} : vector<4x128xbf16>, vector<128x128xbf16>, vector<4x128xf32> -> vector<4x128xf32>
    %58 = vector.broadcast %21 : vector<4x1xf32> to vector<4x128xf32>
    %59 = arith.addf %57, %58 : vector<4x128xf32>
    %60 = vector.extract_strided_slice %28 {offsets = [0, 1, 0], sizes = [1, 1, 128], strides = [1, 1, 1]} : vector<2x3x128xf32> to vector<1x1x128xf32>
    %61 = vector.shape_cast %60 : vector<1x1x128xf32> to vector<1x128xf32>
    %62 = vector.extract_strided_slice %28 {offsets = [1, 1, 0], sizes = [1, 1, 128], strides = [1, 1, 1]} : vector<2x3x128xf32> to vector<1x1x128xf32>
    %63 = vector.shape_cast %62 : vector<1x1x128xf32> to vector<1x128xf32>
    %64 = vector.broadcast %61 : vector<1x128xf32> to vector<64x128xf32>
    %65 = arith.mulf %32, %64 : vector<64x128xf32>
    %66 = vector.broadcast %63 : vector<1x128xf32> to vector<64x128xf32>
    %67 = arith.mulf %35, %66 : vector<64x128xf32>
    %68 = arith.addf %65, %67 : vector<64x128xf32>
    %69 = arith.addf %68, %37 : vector<64x128xf32>
    %cst_27 = arith.constant 0.000000e+00 : f32
    %70 = vector.broadcast %cst_27 : f32 to vector<64x128xf32>
    %71 = arith.maximumf %69, %70 : vector<64x128xf32>
    %72 = arith.truncf %71 : vector<64x128xf32> to vector<64x128xbf16>
    %cst_28 = arith.constant dense<0.000000e+00> : vector<128x128xf32>
    %73 = tpu.matmul %12, %72, %cst_28 {dimension_numbers = #tpu.dot_dimension_numbers<[1], [0], [0], [1], [0, 0, 1, 1], [], []>} : vector<128x64xbf16>, vector<64x128xbf16>, vector<128x128xf32> -> vector<128x128xf32>
    %74 = vector.broadcast %15 : vector<128x1xf32> to vector<128x128xf32>
    %75 = arith.addf %73, %74 : vector<128x128xf32>
    %cst_29 = arith.constant 0.000000e+00 : f32
    %76 = vector.broadcast %cst_29 : f32 to vector<128x128xf32>
    %77 = arith.maximumf %75, %76 : vector<128x128xf32>
    %78 = arith.truncf %77 : vector<128x128xf32> to vector<128x128xbf16>
    %cst_30 = arith.constant dense<0.000000e+00> : vector<4x128xf32>
    %79 = tpu.matmul %18, %78, %cst_30 {dimension_numbers = #tpu.dot_dimension_numbers<[1], [0], [0], [1], [0, 0, 1, 1], [], []>} : vector<4x128xbf16>, vector<128x128xbf16>, vector<4x128xf32> -> vector<4x128xf32>
    %80 = vector.broadcast %21 : vector<4x1xf32> to vector<4x128xf32>
    %81 = arith.addf %79, %80 : vector<4x128xf32>
    %82 = vector.extract_strided_slice %28 {offsets = [0, 2, 0], sizes = [1, 1, 128], strides = [1, 1, 1]} : vector<2x3x128xf32> to vector<1x1x128xf32>
    %83 = vector.shape_cast %82 : vector<1x1x128xf32> to vector<1x128xf32>
    %84 = vector.extract_strided_slice %28 {offsets = [1, 2, 0], sizes = [1, 1, 128], strides = [1, 1, 1]} : vector<2x3x128xf32> to vector<1x1x128xf32>
    %85 = vector.shape_cast %84 : vector<1x1x128xf32> to vector<1x128xf32>
    %86 = vector.broadcast %83 : vector<1x128xf32> to vector<64x128xf32>
    %87 = arith.mulf %32, %86 : vector<64x128xf32>
    %88 = vector.broadcast %85 : vector<1x128xf32> to vector<64x128xf32>
    %89 = arith.mulf %35, %88 : vector<64x128xf32>
    %90 = arith.addf %87, %89 : vector<64x128xf32>
    %91 = arith.addf %90, %37 : vector<64x128xf32>
    %cst_31 = arith.constant 0.000000e+00 : f32
    %92 = vector.broadcast %cst_31 : f32 to vector<64x128xf32>
    %93 = arith.maximumf %91, %92 : vector<64x128xf32>
    %94 = arith.truncf %93 : vector<64x128xf32> to vector<64x128xbf16>
    %cst_32 = arith.constant dense<0.000000e+00> : vector<128x128xf32>
    %95 = tpu.matmul %12, %94, %cst_32 {dimension_numbers = #tpu.dot_dimension_numbers<[1], [0], [0], [1], [0, 0, 1, 1], [], []>} : vector<128x64xbf16>, vector<64x128xbf16>, vector<128x128xf32> -> vector<128x128xf32>
    %96 = vector.broadcast %15 : vector<128x1xf32> to vector<128x128xf32>
    %97 = arith.addf %95, %96 : vector<128x128xf32>
    %cst_33 = arith.constant 0.000000e+00 : f32
    %98 = vector.broadcast %cst_33 : f32 to vector<128x128xf32>
    %99 = arith.maximumf %97, %98 : vector<128x128xf32>
    %100 = arith.truncf %99 : vector<128x128xf32> to vector<128x128xbf16>
    %cst_34 = arith.constant dense<0.000000e+00> : vector<4x128xf32>
    %101 = tpu.matmul %18, %100, %cst_34 {dimension_numbers = #tpu.dot_dimension_numbers<[1], [0], [0], [1], [0, 0, 1, 1], [], []>} : vector<4x128xbf16>, vector<128x128xbf16>, vector<4x128xf32> -> vector<4x128xf32>
    %102 = vector.broadcast %21 : vector<4x1xf32> to vector<4x128xf32>
    %103 = arith.addf %101, %102 : vector<4x128xf32>
    %104 = arith.maximumf %59, %81 : vector<4x128xf32>
    %105 = arith.maximumf %104, %103 : vector<4x128xf32>
    %106 = arith.subf %59, %105 : vector<4x128xf32>
    %107 = math.exp %106 : vector<4x128xf32>
    %108 = arith.subf %81, %105 : vector<4x128xf32>
    %109 = math.exp %108 : vector<4x128xf32>
    %110 = arith.subf %103, %105 : vector<4x128xf32>
    %111 = math.exp %110 : vector<4x128xf32>
    %112 = arith.addf %107, %109 : vector<4x128xf32>
    %113 = arith.addf %112, %111 : vector<4x128xf32>
    %cst_35 = arith.constant 1.000000e+00 : f32
    %114 = vector.broadcast %cst_35 : f32 to vector<4x128xf32>
    %115 = arith.divf %114, %113 : vector<4x128xf32>
    %116 = arith.truncf %3 : vector<32x128xf32> to vector<32x128xbf16>
    %cst_36 = arith.constant dense<0.000000e+00> : vector<32x128xf32>
    %117 = tpu.matmul %24, %116, %cst_36 {dimension_numbers = #tpu.dot_dimension_numbers<[1], [0], [0], [1], [0, 0, 1, 1], [], []>} : vector<32x32xbf16>, vector<32x128xbf16>, vector<32x128xf32> -> vector<32x128xf32>
    %cst_37 = arith.constant 0.000000e+00 : f32
    %118 = vector.broadcast %cst_37 : f32 to vector<8x128xf32>
    %cst_38 = arith.constant 0.000000e+00 : f32
    %119 = vector.broadcast %cst_38 : f32 to vector<8x128xf32>
    %cst_39 = arith.constant 0.000000e+00 : f32
    %120 = vector.broadcast %cst_39 : f32 to vector<8x128xf32>
    %cst_40 = arith.constant 0.000000e+00 : f32
    %121 = vector.broadcast %cst_40 : f32 to vector<8x128xf32>
    %122 = vector.extract_strided_slice %117 {offsets = [0, 127], sizes = [32, 1], strides = [1, 1]} : vector<32x128xf32> to vector<32x1xf32>
    %123 = vector.extract_strided_slice %117 {offsets = [0, 0], sizes = [32, 127], strides = [1, 1]} : vector<32x128xf32> to vector<32x127xf32>
    %124 = tpu.concatenate %122, %123 in 1 : vector<32x1xf32>, vector<32x127xf32> -> vector<32x128xf32>
    %125 = arith.mulf %107, %115 : vector<4x128xf32>
    %126 = vector.extract_strided_slice %29 {offsets = [0, 0, 0], sizes = [1, 1, 128], strides = [1, 1, 1]} : vector<3x1x128xf32> to vector<1x1x128xf32>
    %127 = vector.shape_cast %126 : vector<1x1x128xf32> to vector<1x128xf32>
    %128 = vector.broadcast %127 : vector<1x128xf32> to vector<4x128xf32>
    %129 = arith.mulf %125, %128 : vector<4x128xf32>
    %130 = vector.extract_strided_slice %129 {offsets = [0, 0], sizes = [1, 128], strides = [1, 1]} : vector<4x128xf32> to vector<1x128xf32>
    %131 = vector.extract_strided_slice %124 {offsets = [0, 0], sizes = [8, 128], strides = [1, 1]} : vector<32x128xf32> to vector<8x128xf32>
    %132 = vector.broadcast %130 : vector<1x128xf32> to vector<8x128xf32>
    %133 = arith.mulf %132, %131 : vector<8x128xf32>
    %134 = arith.addf %118, %133 : vector<8x128xf32>
    %135 = vector.extract_strided_slice %129 {offsets = [1, 0], sizes = [1, 128], strides = [1, 1]} : vector<4x128xf32> to vector<1x128xf32>
    %136 = vector.extract_strided_slice %124 {offsets = [8, 0], sizes = [8, 128], strides = [1, 1]} : vector<32x128xf32> to vector<8x128xf32>
    %137 = vector.broadcast %135 : vector<1x128xf32> to vector<8x128xf32>
    %138 = arith.mulf %137, %136 : vector<8x128xf32>
    %139 = arith.addf %119, %138 : vector<8x128xf32>
    %140 = vector.extract_strided_slice %129 {offsets = [2, 0], sizes = [1, 128], strides = [1, 1]} : vector<4x128xf32> to vector<1x128xf32>
    %141 = vector.extract_strided_slice %124 {offsets = [16, 0], sizes = [8, 128], strides = [1, 1]} : vector<32x128xf32> to vector<8x128xf32>
    %142 = vector.broadcast %140 : vector<1x128xf32> to vector<8x128xf32>
    %143 = arith.mulf %142, %141 : vector<8x128xf32>
    %144 = arith.addf %120, %143 : vector<8x128xf32>
    %145 = vector.extract_strided_slice %129 {offsets = [3, 0], sizes = [1, 128], strides = [1, 1]} : vector<4x128xf32> to vector<1x128xf32>
    %146 = vector.extract_strided_slice %124 {offsets = [24, 0], sizes = [8, 128], strides = [1, 1]} : vector<32x128xf32> to vector<8x128xf32>
    %147 = vector.broadcast %145 : vector<1x128xf32> to vector<8x128xf32>
    %148 = arith.mulf %147, %146 : vector<8x128xf32>
    %149 = arith.addf %121, %148 : vector<8x128xf32>
    %150 = arith.mulf %109, %115 : vector<4x128xf32>
    %151 = vector.extract_strided_slice %29 {offsets = [1, 0, 0], sizes = [1, 1, 128], strides = [1, 1, 1]} : vector<3x1x128xf32> to vector<1x1x128xf32>
    %152 = vector.shape_cast %151 : vector<1x1x128xf32> to vector<1x128xf32>
    %153 = vector.broadcast %152 : vector<1x128xf32> to vector<4x128xf32>
    %154 = arith.mulf %150, %153 : vector<4x128xf32>
    %155 = vector.extract_strided_slice %154 {offsets = [0, 0], sizes = [1, 128], strides = [1, 1]} : vector<4x128xf32> to vector<1x128xf32>
    %156 = vector.extract_strided_slice %117 {offsets = [0, 0], sizes = [8, 128], strides = [1, 1]} : vector<32x128xf32> to vector<8x128xf32>
    %157 = vector.broadcast %155 : vector<1x128xf32> to vector<8x128xf32>
    %158 = arith.mulf %157, %156 : vector<8x128xf32>
    %159 = arith.addf %134, %158 : vector<8x128xf32>
    %160 = vector.extract_strided_slice %154 {offsets = [1, 0], sizes = [1, 128], strides = [1, 1]} : vector<4x128xf32> to vector<1x128xf32>
    %161 = vector.extract_strided_slice %117 {offsets = [8, 0], sizes = [8, 128], strides = [1, 1]} : vector<32x128xf32> to vector<8x128xf32>
    %162 = vector.broadcast %160 : vector<1x128xf32> to vector<8x128xf32>
    %163 = arith.mulf %162, %161 : vector<8x128xf32>
    %164 = arith.addf %139, %163 : vector<8x128xf32>
    %165 = vector.extract_strided_slice %154 {offsets = [2, 0], sizes = [1, 128], strides = [1, 1]} : vector<4x128xf32> to vector<1x128xf32>
    %166 = vector.extract_strided_slice %117 {offsets = [16, 0], sizes = [8, 128], strides = [1, 1]} : vector<32x128xf32> to vector<8x128xf32>
    %167 = vector.broadcast %165 : vector<1x128xf32> to vector<8x128xf32>
    %168 = arith.mulf %167, %166 : vector<8x128xf32>
    %169 = arith.addf %144, %168 : vector<8x128xf32>
    %170 = vector.extract_strided_slice %154 {offsets = [3, 0], sizes = [1, 128], strides = [1, 1]} : vector<4x128xf32> to vector<1x128xf32>
    %171 = vector.extract_strided_slice %117 {offsets = [24, 0], sizes = [8, 128], strides = [1, 1]} : vector<32x128xf32> to vector<8x128xf32>
    %172 = vector.broadcast %170 : vector<1x128xf32> to vector<8x128xf32>
    %173 = arith.mulf %172, %171 : vector<8x128xf32>
    %174 = arith.addf %149, %173 : vector<8x128xf32>
    %175 = vector.extract_strided_slice %117 {offsets = [0, 1], sizes = [32, 127], strides = [1, 1]} : vector<32x128xf32> to vector<32x127xf32>
    %176 = vector.extract_strided_slice %117 {offsets = [0, 0], sizes = [32, 1], strides = [1, 1]} : vector<32x128xf32> to vector<32x1xf32>
    %177 = tpu.concatenate %175, %176 in 1 : vector<32x127xf32>, vector<32x1xf32> -> vector<32x128xf32>
    %178 = arith.mulf %111, %115 : vector<4x128xf32>
    %179 = vector.extract_strided_slice %29 {offsets = [2, 0, 0], sizes = [1, 1, 128], strides = [1, 1, 1]} : vector<3x1x128xf32> to vector<1x1x128xf32>
    %180 = vector.shape_cast %179 : vector<1x1x128xf32> to vector<1x128xf32>
    %181 = vector.broadcast %180 : vector<1x128xf32> to vector<4x128xf32>
    %182 = arith.mulf %178, %181 : vector<4x128xf32>
    %183 = vector.extract_strided_slice %182 {offsets = [0, 0], sizes = [1, 128], strides = [1, 1]} : vector<4x128xf32> to vector<1x128xf32>
    %184 = vector.extract_strided_slice %177 {offsets = [0, 0], sizes = [8, 128], strides = [1, 1]} : vector<32x128xf32> to vector<8x128xf32>
    %185 = vector.broadcast %183 : vector<1x128xf32> to vector<8x128xf32>
    %186 = arith.mulf %185, %184 : vector<8x128xf32>
    %187 = arith.addf %159, %186 : vector<8x128xf32>
    %188 = vector.extract_strided_slice %182 {offsets = [1, 0], sizes = [1, 128], strides = [1, 1]} : vector<4x128xf32> to vector<1x128xf32>
    %189 = vector.extract_strided_slice %177 {offsets = [8, 0], sizes = [8, 128], strides = [1, 1]} : vector<32x128xf32> to vector<8x128xf32>
    %190 = vector.broadcast %188 : vector<1x128xf32> to vector<8x128xf32>
    %191 = arith.mulf %190, %189 : vector<8x128xf32>
    %192 = arith.addf %164, %191 : vector<8x128xf32>
    %193 = vector.extract_strided_slice %182 {offsets = [2, 0], sizes = [1, 128], strides = [1, 1]} : vector<4x128xf32> to vector<1x128xf32>
    %194 = vector.extract_strided_slice %177 {offsets = [16, 0], sizes = [8, 128], strides = [1, 1]} : vector<32x128xf32> to vector<8x128xf32>
    %195 = vector.broadcast %193 : vector<1x128xf32> to vector<8x128xf32>
    %196 = arith.mulf %195, %194 : vector<8x128xf32>
    %197 = arith.addf %169, %196 : vector<8x128xf32>
    %198 = vector.extract_strided_slice %182 {offsets = [3, 0], sizes = [1, 128], strides = [1, 1]} : vector<4x128xf32> to vector<1x128xf32>
    %199 = vector.extract_strided_slice %177 {offsets = [24, 0], sizes = [8, 128], strides = [1, 1]} : vector<32x128xf32> to vector<8x128xf32>
    %200 = vector.broadcast %198 : vector<1x128xf32> to vector<8x128xf32>
    %201 = arith.mulf %200, %199 : vector<8x128xf32>
    %202 = arith.addf %174, %201 : vector<8x128xf32>
    %203 = tpu.concatenate %187, %192, %197, %202 in 0 : vector<8x128xf32>, vector<8x128xf32>, vector<8x128xf32>, vector<8x128xf32> -> vector<32x128xf32>
    %204 = vector.broadcast %27 : vector<32x1xf32> to vector<32x128xf32>
    %205 = arith.addf %203, %204 : vector<32x128xf32>
    %c0_41 = arith.constant 0 : index
    %c0_42 = arith.constant 0 : index
    %206 = vector.load %arg14[%c0_41, %c0_42] : memref<32x128xf32, #tpu.memory_space<vmem>>, vector<32x128xf32>
    tpu.vector_store %arg14[%c0_41, %c0_42], %205 {strides = array<i32>} : memref<32x128xf32, #tpu.memory_space<vmem>>, vector<32x128xf32>,
    %c1_i32 = arith.constant 1 : i32
    %207 = arith.cmpi eq, %arg1, %c1_i32 : i32
    %208 = arith.extui %207 : i1 to i32
    %c0_i32_43 = arith.constant 0 : i32
    %209 = arith.cmpi ne, %208, %c0_i32_43 : i32
    scf.if %209 {
      %c0_44 = arith.constant 0 : index
      %c0_45 = arith.constant 0 : index
      %210 = vector.load %arg2[%c0_44, %c0_45] : memref<32x128xf32, #tpu.memory_space<vmem>>, vector<32x128xf32>
      %211 = arith.addf %205, %210 : vector<32x128xf32>
      %c0_46 = arith.constant 0 : index
      %c0_47 = arith.constant 0 : index
      %212 = vector.load %arg13[%c0_46, %c0_47] : memref<32x128xf32, #tpu.memory_space<vmem>>, vector<32x128xf32>
      tpu.vector_store %arg13[%c0_46, %c0_47], %211 {strides = array<i32>} : memref<32x128xf32, #tpu.memory_space<vmem>>, vector<32x128xf32>,
    } else {
    }
    return
  }
  func.func @transform_0(%arg0: i32, %arg1: i32) -> (i32, i32) {
    %c0_i32 = arith.constant 0 : i32
    %c0_i32_0 = arith.constant 0 : i32
    return %c0_i32, %arg0 : i32, i32
  }
  func.func @transform_1(%arg0: i32, %arg1: i32) -> (i32, i32, i32) {
    %c0_i32 = arith.constant 0 : i32
    %c0_i32_0 = arith.constant 0 : i32
    %c0_i32_1 = arith.constant 0 : i32
    return %c0_i32, %c0_i32_0, %arg0 : i32, i32, i32
  }
  func.func @transform_2(%arg0: i32, %arg1: i32) -> (i32, i32, i32) {
    %c0_i32 = arith.constant 0 : i32
    %c0_i32_0 = arith.constant 0 : i32
    %c0_i32_1 = arith.constant 0 : i32
    return %c0_i32, %c0_i32_0, %arg0 : i32, i32, i32
  }
  func.func @transform_3(%arg0: i32, %arg1: i32) -> (i32, i32, i32) {
    %c0_i32 = arith.constant 0 : i32
    %c0_i32_0 = arith.constant 0 : i32
    %c0_i32_1 = arith.constant 0 : i32
    %c0_i32_2 = arith.constant 0 : i32
    return %c0_i32, %c0_i32_0, %c0_i32_1 : i32, i32, i32
  }
  func.func @transform_4(%arg0: i32, %arg1: i32) -> (i32, i32, i32) {
    %c0_i32 = arith.constant 0 : i32
    %c0_i32_0 = arith.constant 0 : i32
    %c0_i32_1 = arith.constant 0 : i32
    %c0_i32_2 = arith.constant 0 : i32
    return %c0_i32, %c0_i32_0, %c0_i32_1 : i32, i32, i32
  }
  func.func @transform_5(%arg0: i32, %arg1: i32) -> (i32, i32, i32) {
    %c0_i32 = arith.constant 0 : i32
    %c0_i32_0 = arith.constant 0 : i32
    %c0_i32_1 = arith.constant 0 : i32
    %c0_i32_2 = arith.constant 0 : i32
    return %c0_i32, %c0_i32_0, %c0_i32_1 : i32, i32, i32
  }
  func.func @transform_6(%arg0: i32, %arg1: i32) -> (i32, i32, i32) {
    %c0_i32 = arith.constant 0 : i32
    %c0_i32_0 = arith.constant 0 : i32
    %c0_i32_1 = arith.constant 0 : i32
    %c0_i32_2 = arith.constant 0 : i32
    return %c0_i32, %c0_i32_0, %c0_i32_1 : i32, i32, i32
  }
  func.func @transform_7(%arg0: i32, %arg1: i32) -> (i32, i32, i32) {
    %c0_i32 = arith.constant 0 : i32
    %c0_i32_0 = arith.constant 0 : i32
    %c0_i32_1 = arith.constant 0 : i32
    %c0_i32_2 = arith.constant 0 : i32
    return %c0_i32, %c0_i32_0, %c0_i32_1 : i32, i32, i32
  }
  func.func @transform_8(%arg0: i32, %arg1: i32) -> (i32, i32, i32) {
    %c0_i32 = arith.constant 0 : i32
    %c0_i32_0 = arith.constant 0 : i32
    %c0_i32_1 = arith.constant 0 : i32
    %c0_i32_2 = arith.constant 0 : i32
    return %c0_i32, %c0_i32_0, %c0_i32_1 : i32, i32, i32
  }
  func.func @transform_9(%arg0: i32, %arg1: i32) -> (i32, i32, i32) {
    %c0_i32 = arith.constant 0 : i32
    %c0_i32_0 = arith.constant 0 : i32
    %c0_i32_1 = arith.constant 0 : i32
    %c0_i32_2 = arith.constant 0 : i32
    return %c0_i32, %c0_i32_0, %c0_i32_1 : i32, i32, i32
  }
  func.func @transform_10(%arg0: i32, %arg1: i32) -> (i32, i32, i32) {
    %c0_i32 = arith.constant 0 : i32
    %c0_i32_0 = arith.constant 0 : i32
    %c0_i32_1 = arith.constant 0 : i32
    %c0_i32_2 = arith.constant 0 : i32
    return %c0_i32, %c0_i32_0, %c0_i32_1 : i32, i32, i32
  }
  func.func @transform_11(%arg0: i32, %arg1: i32) -> (i32, i32) {
    %c0_i32 = arith.constant 0 : i32
    %c0_i32_0 = arith.constant 0 : i32
    return %c0_i32, %arg0 : i32, i32
  }
}

</mosaic_0001>

<bundles_post_ra>
// kernel: tpu_custom_call.1
= control target key start
LH: loop header
LB: loop body
LE: loop exit
PB: predicated region body
PF: predicated region fallthrough
CT: control target
= control target key end

     0   :  { %s2524_s0 = inlined_call_operand.vmem [shape: f32[32,256], index: 0, kind: input, shape index: {}]   ;;  %s2525_s1 = inlined_call_operand.vmem [shape: f32[2,3,256], index: 1, kind: input, shape index: {}]   ;;  %s2526_s2 = inlined_call_operand.vmem [shape: f32[3,1,256], index: 2, kind: input, shape index: {}]   ;;  %s2527_s3 = inlined_call_operand.vmem [shape: f32[2,64,2], index: 3, kind: input, shape index: {}]   ;;  %s2528_s4 = inlined_call_operand.vmem [shape: f32[2,64,1], index: 4, kind: input, shape index: {}]   ;;  %s2529_s5 = inlined_call_operand.vmem [shape: bf16[2,128,64], index: 5, kind: input, shape index: {}]   ;;  %s2530_s6 = inlined_call_operand.vmem [shape: f32[2,128,1], index: 6, kind: input, shape index: {}]   ;;  %s2531_s7 = inlined_call_operand.vmem [shape: bf16[2,4,128], index: 7, kind: input, shape index: {}]   ;;  %s2532_s8 = inlined_call_operand.vmem [shape: f32[2,4,1], index: 8, kind: input, shape index: {}]   ;;  %s2533_s9 = inlined_call_operand.vmem [shape: bf16[2,32,32], index: 9, kind: input, shape index: {}]   ;;  %s2534_s10 = inlined_call_operand.vmem [shape: f32[2,32,1], index: 10, kind: input, shape index: {}]   ;;  %s2535_s11 = inlined_call_operand.hbm [shape: f32[32,256], index: 11, kind: output, shape index: {}]  }
   0x1   :  { %2539 = sst [smem:[#allocation14_spill]] %s2524_s0 }
   0x2   :  { %2540 = sst [smem:[#allocation15_spill]] %s2525_s1 }
   0x3   :  { %2541 = sst [smem:[#allocation16_spill]] %s2526_s2 }
   0x4   :  { %2542 = sst [smem:[#allocation17_spill]] %s2527_s3 }
   0x5   :  { %16 = vsyncpa [#allocation7], 0 }
   0x6   :  { %18 = vsyncpa [#allocation7 + $0x1], 0  ;;  %s2031_s17 = smov 0   ;;  %s2033_s18 = smov 0  }
   0x7   :  { %s2035_s19 = smov 0   ;;  %s2037_s20 = smov 0  }
   0x8   :  { %s2039_s21 = smov 0   ;;  %s2041_s22 = smov 0  }
   0x9   :  { %s2043_s23 = smov 0   ;;  %s2045_s24 = smov 0  }
   0xa LB: > { %2543 = sst [smem:[#allocation9_spill]] %s1954_s22  ;;  %s1661_s25 = sadd.s32 4294967295, %s1962_s24   ;;  %s1962_s24 = sphi %s2045_s24, %s24_s24   ;;  %s1958_s23 = sphi %s2043_s23, %s2564_s23   ;;  %s1954_s22 = sphi %s2041_s22, %s2558_s22   ;;  %s1950_s21 = sphi %s2039_s21, %s2563_s21   ;;  %s1946_s20 = sphi %s2037_s20, %s2557_s20   ;;  %s1942_s19 = sphi %s2035_s19, %s2562_s19   ;;  %s1938_s18 = sphi %s2033_s18, %s2561_s18   ;;  %s1934_s17 = sphi %s2031_s17, %s2560_s17  }
   0xb   : > { %s1662_s26 = sadd.s32 4294967294, %s1962_s24   ;;  %s33_s27 = sadd.s32 1, %s1954_s22 }
   0xc   : > { %p34_p0 = scmp.ge.s32.totalorder %s33_s27, 2  ;;  %s36_s28 = sadd.s32 1, %s1958_s23 }
   0xd   : > { %p50_p1 = scmp.ne.s32.totalorder %s1942_s19, %s1938_s18  ;;  %p51_p2 = scmp.eq.s32.totalorder %s1962_s24, 0 }
   0xe   : > { %s2566_s27 = smov (%p34_p0, %s33_s27), 0  ;;  %s2568_s28 = smov (!%p34_p0, %s36_s28), %s1958_s23 }
   0xf   : > { %2544 = sst [smem:[#allocation10_spill]] %s2566_s27  ;;  %p2081_p3 = por %p51_p2, %p50_p1 }
  0x10   : > { %p300_p4 = scmp.eq.s32.totalorder %s1661_s25, 3  ;;  %p38_p5 = scmp.ge.s32.totalorder %s2568_s28, 2 }
  0x11   : > { %p305_p6 = scmp.ne.s32.totalorder %s1938_s18, %s1934_s17  ;;  %p306_p8 = scmp.eq.s32.totalorder %s1662_s26, 3 }
  0x12   : > { %p2087_p7 = por %p300_p4, %p50_p1  ;;  %s2570_s28 = smov (%p38_p5, %s2568_s28), 0 }
  0x13   : > { %2547 = sst [smem:[#allocation11_spill]] %s2570_s28  ;;  %p2093_p9 = por %p306_p8, %p305_p6 }
  0x14   : > { %s40_s13 = ssub.s32 %s1958_s23, %s2570_s28  ;;  %s43_s14 = sadd.s32 1, %s1942_s19 }
  0x15   : > { %s2548_s12 = scalar_select %p2093_p9, 1, 0 }
  0x16   : > { %p41_p10 = scmp.eq.s32.totalorder %s40_s13, 0  ;;  %p1664_p11 = scmp.ge.s32.totalorder %s1962_s24, 4 }
  0x17   : > { %2549 = sst [smem:[#allocation12_spill]] %s2548_s12 }
  0x18   : > { %s2101_s15 = scalar_select %p41_p10, %s1942_s19, %s43_s14  }
  0x19   : > { %346 = sbr.rel (%p1664_p11) target bundleno = 68 (0x44), region = 48 }
  0x1a   : > { %2550 = sst [smem:[#allocation13_spill]] %s2101_s15 }
  0x1e   : > { %349 = sbr.rel (!%p2081_p3) target bundleno = 44 (0x2c), region = 52  ;;  %s351_s16 = sand.u32 (%p2081_p3), 1, %s1942_s19  }
  0x1f   : > { %s1666_s25 = sshll.u32 (%p2081_p3), %s1958_s23, 3  ;;  %s1665_s26 = sshll.u32 (%p2081_p3), %s351_s16, 5 }
  0x20   : > { %s2551_s0 = sld [smem:[#allocation14_spill]] (%p2081_p3)  ;;  %s353_s13 = scalar_lea.vmem (%p2081_p3), [#allocation3], %s1665_s26 }
  0x26   : > { %s355_s12 = scalar_lea.vmem %s2551_s0, %s1666_s25 }
  0x27   : > { %v390_v0 = vld [vmem:[%s355_s12] sm:$0xff]  ;;  %v392_v1 = vld [vmem:[%s355_s12 + $0x10] sm:$0xff] }
  0x28   : > { %v394_v2 = vld [vmem:[%s355_s12 + $0x20] sm:$0xff]  ;;  %391 = vst [vmem:[%s353_s13] sm:$0xff] %v390_v0  ;;  %v396_v3 = vld [vmem:[%s355_s12 + $0x30] sm:$0xff] }
  0x29   : > { %393 = vst [vmem:[%s353_s13 + $0x8] sm:$0xff] %v392_v1 }
  0x2a   : > { %395 = vst [vmem:[%s353_s13 + $0x10] sm:$0xff] %v394_v2 }
  0x2b   : > { %397 = vst [vmem:[%s353_s13 + $0x18] sm:$0xff] %v396_v3 }
  0x2c PF: > { %403 = sbr.rel (!%p2081_p3) target bundleno = 56 (0x38), region = 90  ;;  %s405_s14 = sand.u32 (%p2081_p3), 1, %s1942_s19  }
  0x2d   : > { %s1668_s16 = sshll.u32 (%p2081_p3), %s1958_s23, 2  ;;  %s1667_s28 = sshll.u32 (%p2081_p3), %s405_s14, 3 }
  0x2e   : > { %s2552_s1 = sld [smem:[#allocation15_spill]] (%p2081_p3)  ;;  %s407_s26 = scalar_lea.vmem (%p2081_p3), [#allocation4], %s1667_s28 }
  0x34   : > { %s409_s25 = scalar_lea.vmem %s2552_s1, %s1668_s16 }
  0x35   : > { %v426_v4 = vld [vmem:[%s409_s25] sm:$0xf]  ;;  %v428_v5 = vld [vmem:[%s409_s25 + $0x8] sm:$0xf] }
  0x36   : > { %427 = vst [vmem:[%s407_s26] sm:$0xf] %v426_v4 }
  0x37   : > { %429 = vst [vmem:[%s407_s26 + $0x4] sm:$0xf] %v428_v5 }
  0x38 PF: > { %457 = sbr.rel (!%p2081_p3) target bundleno = 68 (0x44), region = 131  ;;  %s459_s12 = sand.u32 (%p2081_p3), 1, %s1942_s19  }
  0x39   : > { %s2553_s2 = sld [smem:[#allocation16_spill]] (%p2081_p3)  ;;  %s1765_s15 = smul.u32 (%p2081_p3), 3, %s459_s12 }
  0x3b   : > { %s461_s16 = scalar_lea.vmem (%p2081_p3), [#allocation5], %s1765_s15 }
  0x3f   : > { %s462_s14 = scalar_lea.vmem %s2553_s2, %s1958_s23 }
  0x40   : > { %v479_v6 = vld [vmem:[%s462_s14] sm:$0x1]  ;;  %v481_v7 = vld [vmem:[%s462_s14 + $0x2] sm:$0x1]  ;;  %v483_v8 = vld [vmem:[%s462_s14 + $0x4] sm:$0x1] }
  0x41   : > { %480 = vst [vmem:[%s461_s16] sm:$0x1] %v479_v6 }
  0x42   : > { %482 = vst [vmem:[%s461_s16 + $0x1] sm:$0x1] %v481_v7 }
  0x43   : > { %484 = vst [vmem:[%s461_s16 + $0x2] sm:$0x1] %v483_v8 }
  0x44 PF: > { %p1669_p12 = scmp.ge.s32.totalorder %s1962_s24, 1  ;;  %p505_p13 = scmp.lt.s32.totalorder %s1962_s24, 5 }
  0x46   : > { %p506_p0 = pnand %p1669_p12, %p505_p13 }
  0x47   : > { %s2128_s28 = sand.u32 (!%p506_p0), 1, %s1938_s18   ;;  %p1673_p1 = scmp.ne.s32.totalorder (!%p506_p0), %s1946_s20, 0 }
  0x48   : > { %509 = sbr.rel (%p506_p0) target bundleno = 957 (0x3bd), region = 165  ;;  %s1670_s0 = sshll.u32 (!%p506_p0), %s2128_s28, 5 }
  0x49   : > { %s1671_s29 = sshll.u32 (!%p506_p0), %s2128_s28, 3  ;;  %s1766_s15 = smul.u32 (!%p506_p0), 3, %s2128_s28 }
  0x4a   : > { %s2133_s22 = scalar_lea.vmem (!%p506_p0), [#allocation3], %s1670_s0  ;;  %s2135_s27 = scalar_lea.vmem (!%p506_p0), [#allocation4], %s1671_s29 }
  0x4b   : > { %s2137_s25 = scalar_lea.vmem (!%p506_p0), [#allocation5], %s1766_s15  ;;  %s2139_s26 = scalar_lea.vmem (!%p506_p0), [#allocation6], %s1670_s0 }
  0x4d   : > { %577 = sbr.rel (%p1673_p1) target bundleno = 87 (0x57), region = 181 }
  0x52   : > { %v578_v9 = vld [vmem:[%s2133_s22] sm:$0xff]  ;;  %v579_v10 = vld [vmem:[%s2133_s22 + $0x8] sm:$0xff]  ;;  %v580_v11 = vld [vmem:[%s2133_s22 + $0x10] sm:$0xff] }
  0x53   : > { %582 = vst [vmem:[#allocation2 + $0x10] sm:$0xff] %v578_v9  ;;  %v581_v12 = vld [vmem:[%s2133_s22 + $0x18] sm:$0xff] }
  0x54   : > { %583 = vst [vmem:[#allocation2] sm:$0xff] %v579_v10 }
  0x55   : > { %584 = vst [vmem:[#allocation2 + $0x18] sm:$0xff] %v580_v11 }
  0x56   : > { %585 = vst [vmem:[#allocation2 + $0x8] sm:$0xff] %v581_v12 }
  0x57 PF: > { %s2147_s12 = sshll.u32 %s1946_s20, 6  ;;  %v1964_v13 = vmov 1   ;;  %v1965_v14 = vmov 0   ;;  %s2554_s3 = sld [smem:[#allocation17_spill]]  ;;  %v664_v48 = vld [vmem:[%s2135_s27] sm:$0x7] }
  0x58   : > { %1846 = vset.pattern.permute.xlu1 %v1964_v13  ;;  %1847 = vset.pattern.permute.xlu2 %v1965_v14  ;;  %s2163_s15 = scalar_lea.vmem %s2528_s4, %s2147_s12  ;;  %s1677_s13 = sshll.u32 %s1946_s20, 7  ;;  %v665_v49 = vld [vmem:[%s2135_s27 + $0x4] sm:$0x7]  ;;  %v2211_v53 = vperm.slane %v664_v48, 0  ;;  %v2215_v55 = vperm.slane %v664_v48, 1  ;;  %v2217_v56 = vperm.slane %v664_v48, 2 }
  0x59   : > { %1845 = vset.pattern.permute.xlu0 %v1965_v14  ;;  %v607_v20 = vld [vmem:[%s2163_s15 + $0x30] sm:$0xff]  ;;  %v608_v23 = vld [vmem:[%s2163_s15 + $0x38] sm:$0xff]  ;;  %v606_v25 = vld [vmem:[%s2163_s15 + $0x28] sm:$0xff]  ;;  %s2181_s0 = scalar_lea.vmem %s2530_s6, %s1677_s13  ;;  %s1679_s29 = sshll.u32 %s1946_s20, 2  ;;  %v2213_v54 = vperm.slane %v665_v49, 0  ;;  %v2219_v57 = vperm.slane %v665_v49, 1 }
  0x5a   : > { %v605_v26 = vld [vmem:[%s2163_s15 + $0x20] sm:$0xff]  ;;  %v603_v27 = vld [vmem:[%s2163_s15 + $0x10] sm:$0xff]  ;;  %v604_v28 = vld [vmem:[%s2163_s15 + $0x18] sm:$0xff]  ;;  %s650_s14 = scalar_lea.vmem %s2532_s8, %s1679_s29  ;;  %v2221_v58 = vperm.slane %v665_v49, 2  ;;  %s2306_s27 = scalar_lea.vmem %s2529_s5, %s2147_s12  ;;  %vm947_vm0 = vcmask 523264   ;;  %vm1367_vm1 = vcmask 261120  }
  0x5b   : > { %v601_v29 = vld [vmem:[%s2163_s15] sm:$0xff]  ;;  %v602_v30 = vld [vmem:[%s2163_s15 + $0x8] sm:$0xff]  ;;  %v645_v31 = vld [vmem:[%s2181_s0 + $0x78] sm:$0xff]  ;;  %s1762_s13 = sshll.u32 %s1946_s20, 4  ;;  %s1966_s2 = smov 127  }
  0x5c   : > { %v642_v32 = vld [vmem:[%s2181_s0 + $0x60] sm:$0xff]  ;;  %v643_v33 = vld [vmem:[%s2181_s0 + $0x68] sm:$0xff]  ;;  %v640_v34 = vld [vmem:[%s2181_s0 + $0x50] sm:$0xff]  ;;  %s653_s1 = scalar_lea.vmem %s2533_s9, %s1762_s13  ;;  %p1748_p2 = scmp.ne.s32.totalorder %s1946_s20, 1 }
  0x5d   : > { %s2153_s16 = scalar_lea.vmem %s2554_s3, %s2147_s12  ;;  %v638_v35 = vld [vmem:[%s2181_s0 + $0x40] sm:$0xff]  ;;  %v639_v36 = vld [vmem:[%s2181_s0 + $0x48] sm:$0xff]  ;;  %v637_v37 = vld [vmem:[%s2181_s0 + $0x38] sm:$0xff]  ;;  %s1678_s12 = sshll.u32 %s1946_s20, 1 }
  0x5e   : > { %v598_v15 = vld [vmem:[%s2153_s16 + $0x30] sm:$0xff]  ;;  %v596_v16 = vld [vmem:[%s2153_s16 + $0x20] sm:$0xff]  ;;  %v599_v17 = vld [vmem:[%s2153_s16 + $0x38] sm:$0xff]  ;;  %s647_s15 = scalar_lea.vmem %s2531_s7, %s1678_s12 }
  0x5f   : > { %734 = vperm.xlu1 %1846, %v598_v15   ;;  %701 = vperm.xlu0 %1845, %v598_v15   ;;  %v597_v18 = vld [vmem:[%s2153_s16 + $0x28] sm:$0xff]  ;;  %v595_v19 = vld [vmem:[%s2153_s16 + $0x18] sm:$0xff]  ;;  %v592_v21 = vld [vmem:[%s2153_s16] sm:$0xff] }
  0x60   : > { %691 = vperm.xlu2 %1847, %v596_v16   ;;  %v594_v22 = vld [vmem:[%s2153_s16 + $0x10] sm:$0xff]  ;;  %v593_v24 = vld [vmem:[%s2153_s16 + $0x8] sm:$0xff]  ;;  %v634_v38 = vld [vmem:[%s2181_s0 + $0x20] sm:$0xff]  ;;  %s1681_s16 = sshll.u32 %s1946_s20, 5 }
  0x61   : > { %v632_v40 = vld [vmem:[%s2181_s0 + $0x10] sm:$0xff]  ;;  %v633_v41 = vld [vmem:[%s2181_s0 + $0x18] sm:$0xff]  ;;  %v631_v43 = vld [vmem:[%s2181_s0 + $0x8] sm:$0xff]  ;;  %s2206_s3 = scalar_lea.vmem %s2534_s10, %s1681_s16 }
  0x62   : > { %v651_v46 = vld [vmem:[%s650_s14] sm:$0xf]  ;;  %v644_v15 = vld [vmem:[%s2181_s0 + $0x70] sm:$0xff] }
  0x63   : > { %v660_v52 = vld [vmem:[%s2206_s3] sm:$0xff]  ;;  %v636_v49 = vld [vmem:[%s2181_s0 + $0x30] sm:$0xff] }
  0x67   : > { %738 = vperm.xlu1 %1846, %v599_v17   ;;  %706 = vperm.xlu0 %1845, %v599_v17  }
  0x68   : > { %696 = vperm.xlu2 %1847, %v597_v18  }
  0x6f   : > { %730 = vperm.xlu1 %1846, %v597_v18   ;;  %686 = vperm.xlu0 %1845, %v595_v19  }
  0x70   : > { %773 = vperm.xlu2 %1847, %v607_v20  }
  0x77   : > { %1848 = vset.pattern.permute.xlu1 %v1965_v14  ;;  %671 = vperm.xlu0 %1845, %v592_v21  }
  0x78   : > { %681 = vperm.xlu2 %1847, %v594_v22   ;;  %778 = vperm.xlu1 %1848, %v608_v23  }
  0x7f   : > { %1853 = vset.pattern.permute.xlu0 %v1964_v13 }
  0x80   : > { %1850 = vset.pattern.permute.xlu2 %v1964_v13  ;;  %1849 = vset.pattern.permute.xlu1 %v1964_v13 }
  0x81   : > { %722 = vperm.xlu2 %1850, %v595_v19   ;;  %726 = vperm.xlu0 %1853, %v596_v16  }
  0x82   : > { %718 = vperm.xlu1 %1849, %v594_v22  }
  0x89   : > { %1852 = vset.pattern.permute.xlu2 %v1965_v14  ;;  %714 = vperm.xlu0 %1853, %v593_v24  }
  0x8a   : > { %1851 = vset.pattern.permute.xlu1 %v1965_v14  ;;  %768 = vperm.xlu2 %1852, %v606_v25  }
  0x8b   : > { %763 = vperm.xlu1 %1851, %v605_v26  }
  0x91   : > { %1856 = vset.pattern.permute.xlu0 %v1965_v14 }
  0x92   : > { %1854 = vset.pattern.permute.xlu2 %v1964_v13  ;;  %899 = vperm.xlu0 %1856, %v644_v15  }
  0x93   : > { %676 = vperm.xlu1 %1851, %v593_v24   ;;  %710 = vperm.xlu2 %1854, %v592_v21  }
  0x9b   : > { %753 = vperm.xlu1 %1851, %v603_v27   ;;  %1855 = vset.pattern.permute.xlu2 %v1965_v14 }
  0x9c   : > { %758 = vperm.xlu2 %1855, %v604_v28  }
  0xa3   : > { %743 = vperm.xlu1 %1851, %v601_v29  }
  0xa4   : > { %748 = vperm.xlu2 %1855, %v602_v30  }
  0xab   : > { %904 = vperm.xlu1 %1851, %v645_v31  }
  0xac   : > { %889 = vperm.xlu2 %1855, %v642_v32  }
  0xb3   : > { %894 = vperm.xlu1 %1851, %v643_v33  }
  0xb4   : > { %879 = vperm.xlu2 %1855, %v640_v34  }
  0xba   : > { %v2191_v39 = vpop.permute.xlu2 %691 }
  0xbb   : > { %869 = vperm.xlu1 %1851, %v638_v35   ;;  %v641_v35 = vld [vmem:[%s2181_s0 + $0x58] sm:$0xff] }
  0xbc   : > { %874 = vperm.xlu2 %1855, %v639_v36   ;;  %884 = vperm.xlu0 %1856, %v641_v35  }
  0xc2   : > { %v2196_v42 = vpop.permute.xlu2 %696 }
  0xc3   : > { %864 = vperm.xlu1 %1851, %v637_v37  }
  0xc4   : > { %849 = vperm.xlu2 %1855, %v634_v38   ;;  %859 = vperm.xlu0 %1856, %v636_v49  }
  0xca   : > { %v774_v47 = vpop.permute.xlu2 %773 }
  0xcb   : > { %839 = vperm.xlu1 %1851, %v632_v40  }
  0xcc   : > { %844 = vperm.xlu2 %1855, %v633_v41  }
  0xd1   : > { %v735_v44 = vpop.permute.xlu1 %734  ;;  %v702_v45 = vpop.permute.xlu0 %701 }
  0xd2   : > { %v797_v59 = vmul.f32 %v2213_v54, %v735_v44  ;;  %v788_v60 = vmul.f32 %v2211_v53, %v702_v45  ;;  %v1079_v61 = vmul.f32 %v2219_v57, %v735_v44  ;;  %v1211_v62 = vmul.f32 %v2221_v58, %v735_v44  ;;  %v2229_v1 = vpop.permute.xlu2 %681 }
  0xd3   : > { %834 = vperm.xlu1 %1851, %v631_v43   ;;  %v1070_v63 = vmul.f32 %v2215_v55, %v702_v45  ;;  %v1202_v0 = vmul.f32 %v2217_v56, %v702_v45  ;;  %v787_v43 = vmul.f32 %v2211_v53, %v2196_v42  ;;  %v1069_v44 = vmul.f32 %v2215_v55, %v2196_v42 }
  0xd4   : > { %1047 = vperm.xlu2 %1855, %v651_v46   ;;  %v805_v4 = vadd.f32 %v797_v59, %v788_v60  ;;  %v1201_v46 = vmul.f32 %v2217_v56, %v2196_v42  ;;  %v786_v60 = vmul.f32 %v2211_v53, %v2191_v39 }
  0xd5   : > { %v1087_v7 = vadd.f32 %v1079_v61, %v1070_v63  ;;  %v1219_v8 = vadd.f32 %v1211_v62, %v1202_v0  ;;  %v1068_v61 = vmul.f32 %v2215_v55, %v2191_v39  ;;  %v1200_v62 = vmul.f32 %v2217_v56, %v2191_v39  ;;  %v635_v39 = vld [vmem:[%s2181_s0 + $0x28] sm:$0xff] }
  0xd6   : > { %v813_v13 = vadd.f32 %v805_v4, %v774_v47  ;;  %854 = vperm.xlu0 %1856, %v635_v39  }
  0xd7   : > { %v1095_v14 = vadd.f32 %v1087_v7, %v774_v47  ;;  %v1227_v20 = vadd.f32 %v1219_v8, %v774_v47 }
  0xd8   : > { %v821_v26 = vmax.f32 %v813_v13, 0.0 }
  0xd9   : > { %v739_v50 = vpop.permute.xlu1 %738  ;;  %v707_v51 = vpop.permute.xlu0 %706  ;;  %v1103_v27 = vmax.f32 %v1095_v14, 0.0  ;;  %v1235_v30 = vmax.f32 %v1227_v20, 0.0 }
  0xda   : > { %v798_v5 = vmul.f32 %v2213_v54, %v739_v50  ;;  %v1080_v6 = vmul.f32 %v2219_v57, %v739_v50  ;;  %v1212_v9 = vmul.f32 %v2221_v58, %v739_v50  ;;  %v789_v10 = vmul.f32 %v2211_v53, %v707_v51 }
  0xdb   : > { %v1071_v11 = vmul.f32 %v2215_v55, %v707_v51  ;;  %v1203_v12 = vmul.f32 %v2217_v56, %v707_v51  ;;  %v2240_v16 = vpop.permute.xlu2 %722 }
  0xdc   : > { %1474 = vperm.xlu2 %1855, %v660_v52   ;;  %v806_v17 = vadd.f32 %v798_v5, %v789_v10 }
  0xdd   : > { %v1088_v18 = vadd.f32 %v1080_v6, %v1071_v11  ;;  %v1220_v19 = vadd.f32 %v1212_v9, %v1203_v12 }
  0xe1   : > { %v731_v2 = vpop.permute.xlu1 %730  ;;  %v2231_v3 = vpop.permute.xlu0 %686 }
  0xe2   : > { %v796_v36 = vmul.f32 %v2213_v54, %v731_v2  ;;  %v1078_v37 = vmul.f32 %v2219_v57, %v731_v2  ;;  %v1210_v40 = vmul.f32 %v2221_v58, %v731_v2 }
  0xe4   : > { %v769_v38 = vpop.permute.xlu2 %768  ;;  %v804_v47 = vadd.f32 %v796_v36, %v787_v43  ;;  %v1086_v48 = vadd.f32 %v1078_v37, %v1069_v44  ;;  %v1218_v50 = vadd.f32 %v1210_v40, %v1201_v46 }
  0xe6   : > { %v812_v42 = vadd.f32 %v804_v47, %v769_v38  ;;  %v1094_v63 = vadd.f32 %v1086_v48, %v769_v38  ;;  %v1226_v0 = vadd.f32 %v1218_v50, %v769_v38  ;;  %v1198_v38 = vmul.f32 %v2217_v56, %v2229_v1 }
  0xe8   : > { %v820_v11 = vmax.f32 %v812_v42, 0.0  ;;  %v1102_v12 = vmax.f32 %v1094_v63, 0.0 }
  0xe9   : > { %v2242_v22 = vpop.permute.xlu0 %671 }
  0xea   : > { %v779_v21 = vpop.permute.xlu1 %778 }
  0xeb   : > { %v814_v23 = vadd.f32 %v806_v17, %v779_v21  ;;  %v1096_v24 = vadd.f32 %v1088_v18, %v779_v21  ;;  %v1228_v25 = vadd.f32 %v1220_v19, %v779_v21  ;;  %v1234_v17 = vmax.f32 %v1226_v0, 0.0 }
  0xec   : > { %v794_v21 = vmul.f32 %v2213_v54, %v2240_v16 }
  0xed   : > { %v822_v28 = vmax.f32 %v814_v23, 0.0  ;;  %v1104_v29 = vmax.f32 %v1096_v24, 0.0  ;;  %v1236_v31 = vmax.f32 %v1228_v25, 0.0  ;;  %v711_v6 = vpop.permute.xlu2 %710  ;;  %v1076_v23 = vmul.f32 %v2219_v57, %v2240_v16 }
  0xee   : > { %v785_v24 = vmul.f32 %v2211_v53, %v2231_v3  ;;  %v1208_v25 = vmul.f32 %v2221_v58, %v2240_v16 }
  0xef   : > { %v826_v32 = vpack.c.bf16 %v822_v28, %v821_v26  ;;  %v1108_v33 = vpack.c.bf16 %v1104_v29, %v1103_v27  ;;  %v1240_v34 = vpack.c.bf16 %v1236_v31, %v1235_v30  ;;  %v1067_v26 = vmul.f32 %v2215_v55, %v2231_v3 }
  0xf0   : > { %v1199_v27 = vmul.f32 %v2217_v56, %v2231_v3  ;;  %v784_v30 = vmul.f32 %v2211_v53, %v2229_v1  ;;  %v802_v31 = vadd.f32 %v794_v21, %v785_v24  ;;  %v1066_v3 = vmul.f32 %v2215_v55, %v2229_v1 }
  0xf1   : > { %976 = vmatpush.bf16.msra.mxu0 %v826_v32  ;;  %1113 = vmatpush.bf16.msra.mxu2 %v1108_v33  ;;  %v630_v33 = vld [vmem:[%s2181_s0] sm:$0xff]  ;;  %v1084_v35 = vadd.f32 %v1076_v23, %v1067_v26  ;;  %v791_v1 = vmul.f32 %v2213_v54, %v711_v6 }
  0xf2   : > { %1245 = vmatpush.bf16.msra.mxu1 %v1240_v34  ;;  %v1216_v36 = vadd.f32 %v1208_v25, %v1199_v27  ;;  %829 = vperm.xlu0 %1856, %v630_v33   ;;  %v1756_v33 = vld [vmem:[%s2306_s27 + $0x10] sm:$0xff] }
  0xf3   : > { %v727_v45 = vpop.permute.xlu0 %726 }
  0xf4   : > { %v719_v41 = vpop.permute.xlu1 %718  ;;  %v795_v51 = vmul.f32 %v2213_v54, %v727_v45  ;;  %v1077_v52 = vmul.f32 %v2219_v57, %v727_v45  ;;  %v1209_v59 = vmul.f32 %v2221_v58, %v727_v45 }
  0xf5   : > { %v793_v29 = vmul.f32 %v2213_v54, %v719_v41  ;;  %v1075_v16 = vmul.f32 %v2219_v57, %v719_v41  ;;  %v1207_v34 = vmul.f32 %v2221_v58, %v719_v41 }
  0xf6   : > { %v803_v2 = vadd.f32 %v795_v51, %v786_v60  ;;  %v1085_v4 = vadd.f32 %v1077_v52, %v1068_v61  ;;  %v1217_v5 = vadd.f32 %v1209_v59, %v1200_v62  ;;  %v759_v32 = vpop.permute.xlu2 %758  ;;  %v1073_v59 = vmul.f32 %v2219_v57, %v711_v6 }
  0xf7   : > { %v810_v40 = vadd.f32 %v802_v31, %v759_v32  ;;  %v1092_v43 = vadd.f32 %v1084_v35, %v759_v32  ;;  %v1224_v44 = vadd.f32 %v1216_v36, %v759_v32  ;;  %v801_v45 = vadd.f32 %v793_v29, %v784_v30  ;;  %v1754_v31 = vld [vmem:[%s2306_s27] sm:$0xff]  ;;  %v1755_v32 = vld [vmem:[%s2306_s27 + $0x8] sm:$0xff] }
  0xf8   : > { %v1083_v51 = vadd.f32 %v1075_v16, %v1066_v3  ;;  %v1215_v52 = vadd.f32 %v1207_v34, %v1198_v38  ;;  %v1205_v60 = vmul.f32 %v2221_v58, %v711_v6  ;;  %v1757_v16 = vld [vmem:[%s2306_s27 + $0x18] sm:$0xff]  ;;  %v1758_v34 = vld [vmem:[%s2306_s27 + $0x20] sm:$0xff]  ;;  %v1759_v35 = vld [vmem:[%s2306_s27 + $0x28] sm:$0xff] }
  0xf9   : > { %v818_v0 = vmax.f32 %v810_v40, 0.0  ;;  %v1760_v3 = vld [vmem:[%s2306_s27 + $0x30] sm:$0xff] }
  0xfb   : > { %v715_v37 = vpop.permute.xlu0 %714 }
  0xfc   : > { %v792_v41 = vmul.f32 %v2213_v54, %v715_v37  ;;  %v1074_v48 = vmul.f32 %v2219_v57, %v715_v37  ;;  %v1206_v50 = vmul.f32 %v2221_v58, %v715_v37  ;;  %v782_v54 = vmul.f32 %v2211_v53, %v2242_v22 }
  0xfd   : > { %v764_v7 = vpop.permute.xlu1 %763  ;;  %v1064_v57 = vmul.f32 %v2215_v55, %v2242_v22  ;;  %v1196_v58 = vmul.f32 %v2217_v56, %v2242_v22 }
  0xfe   : > { %v811_v8 = vadd.f32 %v803_v2, %v764_v7  ;;  %v1093_v9 = vadd.f32 %v1085_v4, %v764_v7  ;;  %v1225_v10 = vadd.f32 %v1217_v5, %v764_v7  ;;  %v1100_v5 = vmax.f32 %v1092_v43, 0.0  ;;  %v749_v6 = vpop.permute.xlu2 %748 }
  0xff   : > { %v1232_v7 = vmax.f32 %v1224_v44, 0.0  ;;  %v1761_v44 = vld [vmem:[%s2306_s27 + $0x38] sm:$0xff]  ;;  %s1967_s27 = smov 1  }
 0x100   : > { %v819_v13 = vmax.f32 %v811_v8, 0.0  ;;  %v1101_v14 = vmax.f32 %v1093_v9, 0.0  ;;  %v1233_v15 = vmax.f32 %v1225_v10, 0.0 }
 0x102   : > { %v825_v18 = vpack.c.bf16 %v820_v11, %v819_v13  ;;  %v1107_v19 = vpack.c.bf16 %v1102_v12, %v1101_v14  ;;  %v1239_v20 = vpack.c.bf16 %v1234_v17, %v1233_v15  ;;  %v799_v15 = vadd.f32 %v791_v1, %v782_v54 }
 0x104   : > { %977 = vmatpush.bf16.msra.mxu0 %v825_v18  ;;  %1114 = vmatpush.bf16.msra.mxu2 %v1107_v19  ;;  %v1081_v18 = vadd.f32 %v1073_v59, %v1064_v57  ;;  %v1213_v19 = vadd.f32 %v1205_v60, %v1196_v58  ;;  %v2334_v37 = vpop.permute.xlu0 %899 }
 0x105   : > { %1246 = vmatpush.bf16.msra.mxu1 %v1239_v20  ;;  %v677_v28 = vpop.permute.xlu1 %676 }
 0x106   : > { %v783_v46 = vmul.f32 %v2211_v53, %v677_v28  ;;  %v1065_v47 = vmul.f32 %v2215_v55, %v677_v28  ;;  %v1197_v49 = vmul.f32 %v2217_v56, %v677_v28 }
 0x108   : > { %v800_v2 = vadd.f32 %v792_v41, %v783_v46  ;;  %v1082_v4 = vadd.f32 %v1074_v48, %v1065_v47  ;;  %v1214_v8 = vadd.f32 %v1206_v50, %v1197_v49 }
 0x10a   : > { %v808_v17 = vadd.f32 %v800_v2, %v749_v6  ;;  %v1090_v39 = vadd.f32 %v1082_v4, %v749_v6  ;;  %v1222_v20 = vadd.f32 %v1214_v8, %v749_v6 }
 0x10c   : > { %v816_v24 = vmax.f32 %v808_v17, 0.0  ;;  %v1098_v56 = vmax.f32 %v1090_v39, 0.0  ;;  %v1230_v27 = vmax.f32 %v1222_v20, 0.0 }
 0x10d   : > { %v754_v61 = vpop.permute.xlu1 %753 }
 0x10e   : > { %v809_v62 = vadd.f32 %v801_v45, %v754_v61  ;;  %v1091_v42 = vadd.f32 %v1083_v51, %v754_v61  ;;  %v1223_v63 = vadd.f32 %v1215_v52, %v754_v61  ;;  %v2347_v45 = vpop.permute.xlu2 %889 }
 0x110   : > { %v817_v9 = vmax.f32 %v809_v62, 0.0  ;;  %v1099_v10 = vmax.f32 %v1091_v42, 0.0  ;;  %v1231_v11 = vmax.f32 %v1223_v63, 0.0 }
 0x112   : > { %v824_v12 = vpack.c.bf16 %v818_v0, %v817_v9  ;;  %v1106_v13 = vpack.c.bf16 %v1100_v5, %v1099_v10  ;;  %v1238_v14 = vpack.c.bf16 %v1232_v7, %v1231_v11 }
 0x114   : > { %978 = vmatpush.bf16.msra.mxu0 %v824_v12  ;;  %1115 = vmatpush.bf16.msra.mxu2 %v1106_v13 }
 0x115   : > { %1247 = vmatpush.bf16.msra.mxu1 %v1238_v14  ;;  %v744_v53 = vpop.permute.xlu1 %743 }
 0x116   : > { %v807_v21 = vadd.f32 %v799_v15, %v744_v53  ;;  %v1089_v55 = vadd.f32 %v1081_v18, %v744_v53  ;;  %v1221_v23 = vadd.f32 %v1213_v19, %v744_v53  ;;  %v2356_v41 = vpop.permute.xlu2 %879 }
 0x118   : > { %v815_v22 = vmax.f32 %v807_v21, 0.0  ;;  %v1097_v25 = vmax.f32 %v1089_v55, 0.0  ;;  %v1229_v26 = vmax.f32 %v1221_v23, 0.0 }
 0x11a   : > { %v823_v28 = vpack.c.bf16 %v816_v24, %v815_v22  ;;  %v1105_v29 = vpack.c.bf16 %v1098_v56, %v1097_v25  ;;  %v1237_v30 = vpack.c.bf16 %v1230_v27, %v1229_v26 }
 0x11c   : > { %979 = vmatpush.bf16.msra.mxu0 %v823_v28  ;;  %1116 = vmatpush.bf16.msra.mxu2 %v1105_v29 }
 0x11d   : > { %1248 = vmatpush.bf16.msra.mxu1 %v1237_v30  ;;  %v2332_v36 = vpop.permute.xlu1 %904 }
 0x11e   : > { %v2360_v52 = vpop.permute.xlu2 %874 }
 0x11f   : > { %1714 = vmatmul.msk.bf16.vlgmr.msra.gmra.mxu0 %vm947_vm0, %v1754_v31  ;;  %1722 = vmatmul.msk.bf16.vlgmr.msra.gmra.mxu2 %vm947_vm0, %v1754_v31 }
 0x120   : > { %1730 = vmatmul.msk.bf16.vlgmr.msra.gmra.mxu1 %vm947_vm0, %v1754_v31 }
 0x125   : > { %v2337_v38 = vpop.permute.xlu1 %894 }
 0x126   : > { %v850_v11 = vpop.permute.xlu2 %849 }
 0x12d   : > { %v2344_v43 = vpop.permute.xlu1 %869 }
 0x12e   : > { %v2342_v40 = vpop.permute.xlu0 %884  ;;  %v845_v18 = vpop.permute.xlu2 %844 }
 0x12f   : > { %1715 = vmatmul.msk.bf16.gmra.mxu0 %vm947_vm0, %v1755_v32  ;;  %1723 = vmatmul.msk.bf16.gmra.mxu2 %vm947_vm0, %v1755_v32 }
 0x130   : > { %1731 = vmatmul.msk.bf16.gmra.mxu1 %vm947_vm0, %v1755_v32 }
 0x135   : > { %v2353_v47 = vpop.permute.xlu1 %864 }
 0x136   : > { %v2349_v46 = vpop.permute.xlu0 %859 }
 0x13d   : > { %v840_v49 = vpop.permute.xlu1 %839 }
 0x13f   : > { %1716 = vmatmul.msk.bf16.gmra.mxu0 %vm947_vm0, %v1756_v33  ;;  %1724 = vmatmul.msk.bf16.gmra.mxu2 %vm947_vm0, %v1756_v33 }
 0x140   : > { %1732 = vmatmul.msk.bf16.gmra.mxu1 %vm947_vm0, %v1756_v33 }
 0x145   : > { %v835_v62 = vpop.permute.xlu1 %834 }
 0x148   : > { %v2358_v48 = vpop.permute.xlu0 %854 }
 0x14f   : > { %1717 = vmatmul.msk.bf16.gmra.mxu0 %vm947_vm0, %v1757_v16  ;;  %1725 = vmatmul.msk.bf16.gmra.mxu2 %vm947_vm0, %v1757_v16 }
 0x150   : > { %1733 = vmatmul.msk.bf16.gmra.mxu1 %vm947_vm0, %v1757_v16 }
 0x15f   : > { %1718 = vmatmul.msk.bf16.gmra.mxu0 %vm947_vm0, %v1758_v34  ;;  %1726 = vmatmul.msk.bf16.gmra.mxu2 %vm947_vm0, %v1758_v34 }
 0x160   : > { %1734 = vmatmul.msk.bf16.gmra.mxu1 %vm947_vm0, %v1758_v34 }
 0x164   : > { %v830_v1 = vpop.permute.xlu0 %829 }
 0x16f   : > { %1719 = vmatmul.msk.bf16.gmra.mxu0 %vm947_vm0, %v1759_v35  ;;  %1727 = vmatmul.msk.bf16.gmra.mxu2 %vm947_vm0, %v1759_v35 }
 0x170   : > { %1735 = vmatmul.msk.bf16.gmra.mxu1 %vm947_vm0, %v1759_v35 }
 0x17f   : > { %1720 = vmatmul.msk.bf16.gmra.mxu0 %vm947_vm0, %v1760_v3  ;;  %1728 = vmatmul.msk.bf16.gmra.mxu2 %vm947_vm0, %v1760_v3 }
 0x180   : > { %1736 = vmatmul.msk.bf16.gmra.mxu1 %vm947_vm0, %v1760_v3 }
 0x18f   : > { %1721 = vmatmul.msk.bf16.gmra.mxu0 %vm947_vm0, %v1761_v44  ;;  %1729 = vmatmul.msk.bf16.gmra.mxu2 %vm947_vm0, %v1761_v44 }
 0x190   : > { %1737 = vmatmul.msk.bf16.gmra.mxu1 %vm947_vm0, %v1761_v44 }
 0x19c   : > { %v981_v50 = vpop.f32.mrf.mxu0 }
 0x19d   : > { %v1250_v51 = vpop.f32.mrf.mxu1  ;;  %v982_v61 = vadd.f32 %v981_v50, %v830_v1 }
 0x19e   : > { %v1251_v59 = vadd.f32 %v1250_v51, %v830_v1 }
 0x19f   : > { %v1021_v8 = vmax.f32 %v982_v61, 0.0 }
 0x1a0   : > { %v1290_v2 = vmax.f32 %v1251_v59, 0.0 }
 0x1a2   : > { %v1118_v60 = vpop.f32.mrf.mxu2 }
 0x1a3   : > { %v1119_v5 = vadd.f32 %v1118_v60, %v830_v1 }
 0x1a4   : > { %v983_v42 = vpop.f32.mrf.mxu0 }
 0x1a5   : > { %v984_v63 = vadd.f32 %v983_v42, %v835_v62  ;;  %v1252_v0 = vpop.f32.mrf.mxu1  ;;  %v1158_v58 = vmax.f32 %v1119_v5, 0.0 }
 0x1a6   : > { %v1253_v4 = vadd.f32 %v1252_v0, %v835_v62 }
 0x1a7   : > { %v1022_v7 = vmax.f32 %v984_v63, 0.0 }
 0x1a8   : > { %v1291_v9 = vmax.f32 %v1253_v4, 0.0 }
 0x1a9   : > { %v2362_v10 = vpack.c.bf16 %v1022_v7, %v1021_v8 }
 0x1aa   : > { %v2364_v54 = vpack.c.bf16 %v1291_v9, %v1290_v2  ;;  %v1120_v57 = vpop.f32.mrf.mxu2 }
 0x1ab   : > { %v1121_v6 = vadd.f32 %v1120_v57, %v835_v62 }
 0x1ac   : > { %v986_v12 = vpop.f32.mrf.mxu0 }
 0x1ad   : > { %v1159_v13 = vmax.f32 %v1121_v6, 0.0  ;;  %v1255_v14 = vpop.f32.mrf.mxu1  ;;  %v987_v39 = vadd.f32 %v986_v12, %v840_v49 }
 0x1ae   : > { %v1256_v19 = vadd.f32 %v1255_v14, %v840_v49 }
 0x1af   : > { %v2366_v15 = vpack.c.bf16 %v1159_v13, %v1158_v58  ;;  %v1023_v23 = vmax.f32 %v987_v39, 0.0 }
 0x1b0   : > { %v1292_v56 = vmax.f32 %v1256_v19, 0.0 }
 0x1b2   : > { %v1123_v17 = vpop.f32.mrf.mxu2 }
 0x1b3   : > { %v1124_v25 = vadd.f32 %v1123_v17, %v840_v49 }
 0x1b4   : > { %v988_v20 = vpop.f32.mrf.mxu0 }
 0x1b5   : > { %v989_v53 = vadd.f32 %v988_v20, %v845_v18  ;;  %v1257_v21 = vpop.f32.mrf.mxu1  ;;  %v1160_v31 = vmax.f32 %v1124_v25, 0.0 }
 0x1b6   : > { %v1258_v55 = vadd.f32 %v1257_v21, %v845_v18 }
 0x1b7   : > { %v1024_v24 = vmax.f32 %v989_v53, 0.0 }
 0x1b8   : > { %v1293_v22 = vmax.f32 %v1258_v55, 0.0 }
 0x1b9   : > { %v2368_v26 = vpack.c.bf16 %v1024_v24, %v1023_v23 }
 0x1ba   : > { %v2370_v27 = vpack.c.bf16 %v1293_v22, %v1292_v56  ;;  %v1125_v28 = vpop.f32.mrf.mxu2 }
 0x1bb   : > { %v1126_v29 = vadd.f32 %v1125_v28, %v845_v18 }
 0x1bc   : > { %v991_v30 = vpop.f32.mrf.mxu0 }
 0x1bd   : > { %v1161_v32 = vmax.f32 %v1126_v29, 0.0  ;;  %v1260_v33 = vpop.f32.mrf.mxu1  ;;  %v992_v35 = vadd.f32 %v991_v30, %v850_v11 }
 0x1be   : > { %v1261_v3 = vadd.f32 %v1260_v33, %v850_v11 }
 0x1bf   : > { %v2372_v16 = vpack.c.bf16 %v1161_v32, %v1160_v31  ;;  %v1025_v1 = vmax.f32 %v992_v35, 0.0 }
 0x1c0   : > { %v1294_v60 = vmax.f32 %v1261_v3, 0.0 }
 0x1c2   : > { %v1128_v34 = vpop.f32.mrf.mxu2 }
 0x1c3   : > { %v1129_v62 = vadd.f32 %v1128_v34, %v850_v11 }
 0x1c4   : > { %v993_v44 = vpop.f32.mrf.mxu0 }
 0x1c5   : > { %v994_v50 = vadd.f32 %v993_v44, %v2358_v48  ;;  %v1262_v51 = vpop.f32.mrf.mxu1  ;;  %v1162_v5 = vmax.f32 %v1129_v62, 0.0 }
 0x1c6   : > { %v1263_v49 = vadd.f32 %v1262_v51, %v2358_v48 }
 0x1c7   : > { %v1026_v59 = vmax.f32 %v994_v50, 0.0 }
 0x1c8   : > { %v1295_v61 = vmax.f32 %v1263_v49, 0.0 }
 0x1c9   : > { %v2376_v42 = vpack.c.bf16 %v1026_v59, %v1025_v1 }
 0x1ca   : > { %v2378_v63 = vpack.c.bf16 %v1295_v61, %v1294_v60  ;;  %v1130_v0 = vpop.f32.mrf.mxu2 }
 0x1cb   : > { %v1131_v2 = vadd.f32 %v1130_v0, %v2358_v48 }
 0x1cc   : > { %v996_v4 = vpop.f32.mrf.mxu0 }
 0x1cd   : > { %v1163_v7 = vmax.f32 %v1131_v2, 0.0  ;;  %v1265_v8 = vpop.f32.mrf.mxu1  ;;  %v997_v6 = vadd.f32 %v996_v4, %v2349_v46 }
 0x1ce   : > { %v1266_v57 = vadd.f32 %v1265_v8, %v2349_v46 }
 0x1cf   : > { %v2381_v9 = vpack.c.bf16 %v1163_v7, %v1162_v5  ;;  %v1027_v39 = vmax.f32 %v997_v6, 0.0 }
 0x1d0   : > { %v1296_v14 = vmax.f32 %v1266_v57, 0.0 }
 0x1d2   : > { %v1133_v58 = vpop.f32.mrf.mxu2 }
 0x1d3   : > { %v1134_v48 = vadd.f32 %v1133_v58, %v2349_v46 }
 0x1d4   : > { %v998_v12 = vpop.f32.mrf.mxu0 }
 0x1d5   : > { %v999_v11 = vadd.f32 %v998_v12, %v2353_v47  ;;  %v1267_v13 = vpop.f32.mrf.mxu1  ;;  %v1164_v55 = vmax.f32 %v1134_v48, 0.0 }
 0x1d6   : > { %v1268_v17 = vadd.f32 %v1267_v13, %v2353_v47 }
 0x1d7   : > { %v1028_v18 = vmax.f32 %v999_v11, 0.0 }
 0x1d8   : > { %v1297_v19 = vmax.f32 %v1268_v17, 0.0 }
 0x1d9   : > { %v1040_v20 = vpack.c.bf16 %v1028_v18, %v1027_v39 }
 0x1da   : > { %v2388_v53 = vpack.c.bf16 %v1297_v19, %v1296_v14  ;;  %v1135_v21 = vpop.f32.mrf.mxu2 }
 0x1db   : > { %v1136_v23 = vadd.f32 %v1135_v21, %v2353_v47 }
 0x1dc   : > { %v1001_v24 = vpop.f32.mrf.mxu0 }
 0x1dd   : > { %v1165_v56 = vmax.f32 %v1136_v23, 0.0  ;;  %v1270_v22 = vpop.f32.mrf.mxu1  ;;  %v1002_v21 = vadd.f32 %v1001_v24, %v2344_v43 }
 0x1de   : > { %v2392_v25 = vadd.f32 %v1270_v22, %v2344_v43 }
 0x1df   : > { %v2394_v28 = vpack.c.bf16 %v1165_v56, %v1164_v55 }
 0x1e2   : > { %v2396_v30 = vpop.f32.mrf.mxu2 }
 0x1e4   : > { %v1003_v29 = vpop.f32.mrf.mxu0 }
 0x1e5   : > { %v2398_v46 = vpop.f32.mrf.mxu1  ;;  %v1004_v48 = vadd.f32 %v1003_v29, %v2360_v52 }
 0x1e7   : > { %v1030_v23 = vmax.f32 %v1004_v48, 0.0 }
 0x1ea   : > { %v2402_v33 = vpop.f32.mrf.mxu2 }
 0x1ec   : > { %v1006_v31 = vpop.f32.mrf.mxu0 }
 0x1ed   : > { %v2400_v32 = vpop.f32.mrf.mxu1  ;;  %v1007_v17 = vadd.f32 %v1006_v31, %v2356_v41 }
 0x1ef   : > { %v1031_v55 = vmax.f32 %v1007_v17, 0.0 }
 0x1f2   : > { %v1143_v35 = vpop.f32.mrf.mxu2 }
 0x1f4   : > { %v1008_v34 = vpop.f32.mrf.mxu0 }
 0x1f5   : > { %v2404_v47 = vpop.f32.mrf.mxu1  ;;  %v1009_v11 = vadd.f32 %v1008_v34, %v2342_v40 }
 0x1f7   : > { %v1032_v18 = vmax.f32 %v1009_v11, 0.0  ;;  %v1298_v11 = vmax.f32 %v2392_v25, 0.0 }
 0x1f9   : > { %v1042_v22 = vpack.c.bf16 %v1032_v18, %v1031_v55 }
 0x1fa   : > { %v1145_v50 = vpop.f32.mrf.mxu2 }
 0x1fc   : > { %v1011_v3 = vpop.f32.mrf.mxu0 }
 0x1fd   : > { %v1280_v44 = vpop.f32.mrf.mxu1  ;;  %v1012_v57 = vadd.f32 %v1011_v3, %v2347_v45  ;;  %v1029_v3 = vmax.f32 %v1002_v21, 0.0 }
 0x1fe   : > { %v1281_v51 = vadd.f32 %v1280_v44, %v2347_v45 }
 0x1ff   : > { %v1033_v39 = vmax.f32 %v1012_v57, 0.0  ;;  %v1041_v34 = vpack.c.bf16 %v1030_v23, %v1029_v3 }
 0x200   : > { %v1302_v60 = vmax.f32 %v1281_v51, 0.0 }
 0x202   : > { %v1148_v2 = vpop.f32.mrf.mxu2 }
 0x204   : > { %v1013_v49 = vpop.f32.mrf.mxu0 }
 0x205   : > { %v1282_v1 = vpop.f32.mrf.mxu1  ;;  %v1014_v7 = vadd.f32 %v1013_v49, %v2337_v38  ;;  %v1149_v49 = vadd.f32 %v1148_v2, %v2347_v45  ;;  %v1139_v2 = vadd.f32 %v2396_v30, %v2344_v43  ;;  %v1278_v30 = vadd.f32 %v2404_v47, %v2342_v40 }
 0x206   : > { %v1283_v59 = vadd.f32 %v1282_v1, %v2337_v38 }
 0x207   : > { %v1034_v13 = vmax.f32 %v1014_v7, 0.0 }
 0x208   : > { %v1303_v61 = vmax.f32 %v1283_v59, 0.0 }
 0x209   : > { %v1043_v19 = vpack.c.bf16 %v1034_v13, %v1033_v39 }
 0x20a   : > { %v2408_v62 = vpack.c.bf16 %v1303_v61, %v1302_v60  ;;  %v1150_v58 = vpop.f32.mrf.mxu2  ;;  %v1144_v61 = vadd.f32 %v1143_v35, %v2356_v41 }
 0x20b   : > { %v1151_v24 = vadd.f32 %v1150_v58, %v2337_v38  ;;  %v1170_v38 = vmax.f32 %v1149_v49, 0.0 }
 0x20c   : > { %v1016_v0 = vpop.f32.mrf.mxu0 }
 0x20d   : > { %v1017_v4 = vadd.f32 %v1016_v0, %v2334_v37  ;;  %v1171_v59 = vmax.f32 %v1151_v24, 0.0 }
 0x20f   : > { %v1035_v6 = vmax.f32 %v1017_v4, 0.0  ;;  %v1180_v0 = vpack.c.bf16 %v1171_v59, %v1170_v38  ;;  %v1168_v4 = vmax.f32 %v1144_v61, 0.0 }
 0x212   : > { %v1153_v56 = vpop.f32.mrf.mxu2 }
 0x213   : > { %v1154_v29 = vadd.f32 %v1153_v56, %v2334_v37 }
 0x214   : > { %v1018_v5 = vpop.f32.mrf.mxu0 }
 0x215   : > { %v1019_v8 = vadd.f32 %v1018_v5, %v2332_v36  ;;  %v1172_v1 = vmax.f32 %v1154_v29, 0.0  ;;  %v1285_v5 = vpop.f32.mrf.mxu1 }
 0x216   : > { %v1286_v57 = vadd.f32 %v1285_v5, %v2334_v37 }
 0x217   : > { %v1036_v12 = vmax.f32 %v1019_v8, 0.0 }
 0x218   : > { %v1304_v43 = vmax.f32 %v1286_v57, 0.0 }
 0x219   : > { %v1044_v14 = vpack.c.bf16 %v1036_v12, %v1035_v6  ;;  %v1276_v12 = vadd.f32 %v2400_v32, %v2356_v41  ;;  %v588_v41 = vld [vmem:[#allocation2 + $0x18] sm:$0xff]  ;;  %v587_v32 = vld [vmem:[#allocation2] sm:$0xff] }
 0x21a   : > { %v1155_v44 = vpop.f32.mrf.mxu2 }
 0x21b   : > { %1050 = vmatpush.bf16.msra.mxu3 %v1044_v14  ;;  %v1156_v31 = vadd.f32 %v1155_v44, %v2332_v36  ;;  %v1300_v37 = vmax.f32 %v1276_v12, 0.0 }
 0x21d   : > { %v1173_v51 = vmax.f32 %v1156_v31, 0.0  ;;  %v1287_v35 = vpop.f32.mrf.mxu1 }
 0x21f   : > { %1051 = vmatpush.bf16.msra.mxu3 %v1043_v19  ;;  %v1181_v60 = vpack.c.bf16 %v1173_v51, %v1172_v1 }
 0x223   : > { %1052 = vmatpush.bf16.msra.mxu3 %v1042_v22 }
 0x227   : > { %1053 = vmatpush.bf16.msra.mxu3 %v1041_v34 }
 0x22b   : > { %1054 = vmatpush.bf16.msra.mxu3 %v1040_v20  ;;  %v1146_v20 = vadd.f32 %v1145_v50, %v2342_v40 }
 0x22d   : > { %v1169_v45 = vmax.f32 %v1146_v20, 0.0 }
 0x22f   : > { %1055 = vmatpush.bf16.msra.mxu3 %v2376_v42  ;;  %v648_v42 = vld [vmem:[%s647_s15] sm:$0x3]  ;;  %v1179_v7 = vpack.c.bf16 %v1169_v45, %v1168_v4  ;;  %v1857_v4 = vld [vmem:[%s2137_s25 + $0x1] ss:$0 sm:$0xff] }
 0x233   : > { %1056 = vmatpush.bf16.msra.mxu3 %v2368_v26  ;;  %v1141_v26 = vadd.f32 %v2402_v33, %v2360_v52  ;;  %v1288_v33 = vadd.f32 %v1287_v35, %v2332_v36  ;;  %v1273_v36 = vadd.f32 %v2398_v46, %v2360_v52  ;;  %v586_v46 = vld [vmem:[#allocation2 + $0x10] sm:$0xff] }
 0x234   : > { %v1355_v47 = vpack.c.bf16 %v587_v32, %v586_v46  ;;  %v1858_v46 = vld [vmem:[%s2137_s25 + $0x2] ss:$0 sm:$0xff] }
 0x235   : > { %v1167_v50 = vmax.f32 %v1141_v26, 0.0  ;;  %v1305_v58 = vmax.f32 %v1288_v33, 0.0 }
 0x237   : > { %1057 = vmatpush.bf16.msra.mxu3 %v2362_v10  ;;  %v1166_v10 = vmax.f32 %v1139_v2, 0.0  ;;  %v1313_v6 = vpack.c.bf16 %v1305_v58, %v1304_v43 }
 0x239   : > { %v1178_v8 = vpack.c.bf16 %v1167_v50, %v1166_v10  ;;  %v663_v10 = vld [vmem:[%s2206_s3 + $0x18] sm:$0xff] }
 0x23a   : > { %1058 = vmatmul.bf16.vlgmr.msra.gmra.mxu3 %v648_v42 }
 0x23b   : > { %1182 = vmatpush.bf16.msrb.mxu3 %v1181_v60 }
 0x23f   : > { %1183 = vmatpush.bf16.msrb.mxu3 %v1180_v0 }
 0x243   : > { %1184 = vmatpush.bf16.msrb.mxu3 %v1179_v7 }
 0x247   : > { %1185 = vmatpush.bf16.msrb.mxu3 %v1178_v8 }
 0x24b   : > { %1186 = vmatpush.bf16.msrb.mxu3 %v2394_v28 }
 0x24f   : > { %1187 = vmatpush.bf16.msrb.mxu3 %v2381_v9  ;;  %v1301_v9 = vmax.f32 %v1278_v30, 0.0 }
 0x251   : > { %v1311_v28 = vpack.c.bf16 %v1301_v9, %v1300_v37  ;;  %v662_v37 = vld [vmem:[%s2206_s3 + $0x10] sm:$0xff] }
 0x253   : > { %1188 = vmatpush.bf16.msrb.mxu3 %v2372_v16  ;;  %v1299_v16 = vmax.f32 %v1273_v36, 0.0 }
 0x255   : > { %v1310_v40 = vpack.c.bf16 %v1299_v16, %v1298_v11  ;;  %v661_v16 = vld [vmem:[%s2206_s3 + $0x8] sm:$0xff]  ;;  %v1859_v11 = vld [vmem:[%s2137_s25] ss:$0 sm:$0xff] }
 0x257   : > { %1189 = vmatpush.bf16.msrb.mxu3 %v2366_v15  ;;  %v589_v15 = vld [vmem:[#allocation2 + $0x8] sm:$0xff] }
 0x258   : > { %v1356_v52 = vpack.c.bf16 %v589_v15, %v588_v41 }
 0x25a   : > { %1190 = vmatmul.bf16.vlgmr.msrb.gmra.mxu3 %v648_v42 }
 0x25b   : > { %1314 = vmatpush.bf16.msra.mxu3 %v1313_v6 }
 0x25f   : > { %1315 = vmatpush.bf16.msra.mxu3 %v2408_v62  ;;  %v1048_v62 = vpop.permute.xlu2 %1047 }
 0x263   : > { %1316 = vmatpush.bf16.msra.mxu3 %v1311_v28 }
 0x267   : > { %1317 = vmatpush.bf16.msra.mxu3 %v1310_v40  ;;  %v1475_v28 = vpop.permute.xlu2 %1474 }
 0x26b   : > { %1318 = vmatpush.bf16.msra.mxu3 %v2388_v53  ;;  %v1763_v53 = vld [vmem:[%s653_s1] sm:$0xff] }
 0x26f   : > { %1319 = vmatpush.bf16.msra.mxu3 %v2378_v63  ;;  %v1764_v63 = vld [vmem:[%s653_s1 + $0x8] sm:$0xff] }
 0x273   : > { %1320 = vmatpush.bf16.msra.mxu3 %v2370_v27 }
 0x277   : > { %1321 = vmatpush.bf16.msra.mxu3 %v2364_v54 }
 0x27a   : > { %1322 = vmatmul.bf16.vlgmr.msra.gmra.mxu3 %v648_v42 }
 0x27b   : > { %1380 = vmatpush.bf16.msrb.mxu3 %v1356_v52 }
 0x27f   : > { %1381 = vmatpush.bf16.msrb.mxu3 %v1355_v47 }
 0x28a   : > { %1746 = vmatmul.msk.bf16.vlgmr.msrb.gmra.mxu3 %vm1367_vm1, %v1763_v53 }
 0x29a   : > { %1747 = vmatmul.msk.bf16.gmra.mxu3 %vm1367_vm1, %v1764_v63 }
 0x2bd   : > { %v1059_v27 = vpop.f32.mrf.mxu3 }
 0x2be   : > { %v1060_v14 = vadd.f32 %v1059_v27, %v1048_v62 }
 0x2c5   : > { %v1061_v25 = vpop.f32.mrf.mxu3 }
 0x2dd   : > { %v1191_v13 = vpop.f32.mrf.mxu3 }
 0x2de   : > { %v1192_v54 = vadd.f32 %v1191_v13, %v1048_v62 }
 0x2e0   : > { %v1327_v17 = vmax.f32 %v1060_v14, %v1192_v54 }
 0x2e5   : > { %v1193_v39 = vpop.f32.mrf.mxu3 }
 0x2fd   : > { %v1323_v48 = vpop.f32.mrf.mxu3 }
 0x2fe   : > { %v1324_v18 = vadd.f32 %v1323_v48, %v1048_v62 }
 0x300   : > { %v1328_v19 = vmax.f32 %v1327_v17, %v1324_v18 }
 0x302   : > { %v1329_v21 = vsub.f32 %v1060_v14, %v1328_v19  ;;  %v1332_v55 = vsub.f32 %v1192_v54, %v1328_v19  ;;  %v1335_v23 = vsub.f32 %v1324_v18, %v1328_v19 }
 0x304   : > { %v1330_v56 = vmul.f32 1.442695, %v1329_v21  ;;  %v1333_v22 = vmul.f32 1.442695, %v1332_v55  ;;  %v1336_v3 = vmul.f32 1.442695, %v1335_v23 }
 0x305   : > { %v1325_v34 = vpop.f32.mrf.mxu3 }
 0x306   : > { %1860 = vpow2.f32 %v1330_v56 }
 0x307   : > { %1862 = vpow2.f32 %v1333_v22 }
 0x308   : > { %1864 = vpow2.f32 %v1336_v3 }
 0x30c   : > { %v1861_v44 = vpop.eup %1860 }
 0x30d   : > { %v1863_v31 = vpop.eup %1862  ;;  %v1383_v29 = vpop.f32.mrf.mxu3 }
 0x30e   : > { %v1338_v24 = vadd.f32 %v1863_v31, %v1861_v44  ;;  %1443 = vrot.lane.b32.xlu1 %v1383_v29, %s1966_s2  ;;  %1397 = vrot.lane.b32.xlu0 %v1383_v29, %s1967_s27  ;;  %v1865_v51 = vpop.eup %1864 }
 0x310   : > { %v1339_v49 = vadd.f32 %v1865_v51, %v1338_v24 }
 0x312   : > { %1866 = vrcp.f32 %v1339_v49  ;;  %v1351_v42 = vand.u32 2147483648, %v1339_v49  ;;  %v1349_v38 = vand.u32 2147483647, %v1339_v49  ;;  %vm1345_vm3 = vweird.f32 %v1339_v49 }
 0x314   : > { %v1352_v0 = vor.u32 1.1754944e-38, %v1351_v42  ;;  %vm1350_vm5 = vcmp.eq.f32.partialorder %v1349_v38, 8.507059e+37 }
 0x315   : > { %v1385_v1 = vpop.f32.mrf.mxu3 }
 0x316   : > { %1445 = vrot.lane.b32.xlu2 %v1385_v1, %s1966_s2  ;;  %1399 = vrot.lane.b32.xlu1 %v1385_v1, %s1967_s27 }
 0x318   : > { %v1867_v20 = vpop.eup %1866 }
 0x319   : > { %v1341_v59 = vmul.f32 %v1867_v20, %v1339_v49  ;;  %vm1346_vm2 = vweird.f32 %v1867_v20 }
 0x31a   : > { %vm1347_vm4 = vmor %vm1345_vm3, %vm1346_vm2 }
 0x31b   : > { %v1342_v60 = vsub.f32 1.0, %v1341_v59 }
 0x31d   : > { %v1343_v61 = vmul.f32 %v1867_v20, %v1342_v60  ;;  %v1388_v26 = vpop.f32.mrf.mxu3 }
 0x31e   : > { %1447 = vrot.lane.b32.xlu0 %v1388_v26, %s1966_s2  ;;  %1401 = vrot.lane.b32.xlu2 %v1388_v26, %s1967_s27 }
 0x31f   : > { %v1344_v45 = vadd.f32 %v1867_v20, %v1343_v61 }
 0x321   : > { %v1348_v2 = vsel %vm1347_vm4, %v1867_v20, %v1344_v45 }
 0x322   : > { %v1353_v50 = vsel %vm1350_vm5, %v1352_v0, %v1348_v2 }
 0x323   : > { %v1426_v5 = vmul.f32 %v1863_v31, %v1353_v50  ;;  %v1455_v7 = vmul.f32 %v1865_v51, %v1353_v50  ;;  %v1409_v8 = vmul.f32 %v1861_v44, %v1353_v50 }
 0x325   : > { %v1430_v35 = vmul.f32 %v1857_v4, %v1426_v5  ;;  %v1390_v33 = vpop.f32.mrf.mxu3  ;;  %v1413_v41 = vmul.f32 %v1859_v11, %v1409_v8  ;;  %v1459_v53 = vmul.f32 %v1858_v46, %v1455_v7 }
 0x326   : > { %1489 = vperm.xlu2 %1855, %v663_v10   ;;  %1449 = vrot.lane.b32.xlu1 %v1390_v33, %s1966_s2 }
 0x327   : > { %v1431_v57 = vperm.slane %v1430_v35, 0  ;;  %v1434_v58 = vperm.slane %v1430_v35, 1  ;;  %v1437_v43 = vperm.slane %v1430_v35, 2  ;;  %v1440_v30 = vperm.slane %v1430_v35, 3  ;;  %1403 = vrot.lane.b32.xlu0 %v1390_v33, %s1967_s27 }
 0x328   : > { %v1420_v15 = vperm.slane %v1413_v41, 2  ;;  %v1414_v63 = vperm.slane %v1413_v41, 0  ;;  %v1460_v62 = vperm.slane %v1459_v53, 0  ;;  %v1417_v48 = vperm.slane %v1413_v41, 1 }
 0x329   : > { %v1432_v6 = vmul.f32 %v1431_v57, %v1383_v29  ;;  %v1435_v12 = vmul.f32 %v1434_v58, %v1385_v1  ;;  %v1438_v36 = vmul.f32 %v1437_v43, %v1388_v26  ;;  %v1441_v9 = vmul.f32 %v1440_v30, %v1390_v33 }
 0x32a   : > { %v1463_v19 = vperm.slane %v1459_v53, 1  ;;  %v1466_v22 = vperm.slane %v1459_v53, 2  ;;  %v1423_v29 = vperm.slane %v1413_v41, 3  ;;  %v1469_v51 = vperm.slane %v1459_v53, 3 }
 0x32e   : > { %1484 = vperm.xlu1 %1851, %v662_v37  }
 0x32f   : > { %1479 = vperm.xlu0 %1856, %v661_v16  }
 0x370   : > { %v1446_v40 = vpop.permute.xlu2 %1445 }
 0x371   : > { %v1464_v55 = vmul.f32 %v1463_v19, %v1446_v40 }
 0x378   : > { %v1402_v52 = vpop.permute.xlu2 %1401 }
 0x379   : > { %v1421_v32 = vmul.f32 %v1420_v15, %v1402_v52 }
 0x37b   : > { %v1439_v47 = vadd.f32 %v1438_v36, %v1421_v32 }
 0x380   : > { %v1444_v27 = vpop.permute.xlu1 %1443  ;;  %v1398_v25 = vpop.permute.xlu0 %1397 }
 0x381   : > { %v1415_v13 = vmul.f32 %v1414_v63, %v1398_v25  ;;  %v1461_v14 = vmul.f32 %v1460_v62, %v1444_v27  ;;  %v1490_v60 = vpop.permute.xlu2 %1489 }
 0x383   : > { %v1433_v54 = vadd.f32 %v1432_v6, %v1415_v13 }
 0x385   : > { %v1462_v17 = vadd.f32 %v1461_v14, %v1433_v54 }
 0x387   : > { %v1492_v39 = vadd.f32 %v1475_v28, %v1462_v17 }
 0x388   : > { %v1400_v18 = vpop.permute.xlu1 %1399 }
 0x389   : > { %1496 = vst [vmem:[#allocation2 + $0x10] sm:$0xff] %v1492_v39  ;;  %v1418_v21 = vmul.f32 %v1417_v48, %v1400_v18 }
 0x38b   : > { %v1436_v23 = vadd.f32 %v1435_v12, %v1418_v21 }
 0x38d   : > { %v1465_v56 = vadd.f32 %v1464_v55, %v1436_v23 }
 0x390   : > { %v1448_v3 = vpop.permute.xlu0 %1447 }
 0x391   : > { %v1467_v34 = vmul.f32 %v1466_v22, %v1448_v3 }
 0x393   : > { %v1468_v44 = vadd.f32 %v1467_v34, %v1439_v47 }
 0x398   : > { %v1450_v31 = vpop.permute.xlu1 %1449 }
 0x399   : > { %v1404_v24 = vpop.permute.xlu0 %1403  ;;  %v1470_v1 = vmul.f32 %v1469_v51, %v1450_v31 }
 0x39a   : > { %v1424_v49 = vmul.f32 %v1423_v29, %v1404_v24 }
 0x39c   : > { %v1442_v20 = vadd.f32 %v1441_v9, %v1424_v49 }
 0x39e   : > { %v1471_v59 = vadd.f32 %v1470_v1, %v1442_v20 }
 0x3a0   : > { %v1495_v42 = vadd.f32 %v1490_v60, %v1471_v59  ;;  %v1485_v61 = vpop.permute.xlu1 %1484  ;;  %1503 = sbr.rel (%p1748_p2) target bundleno = 940 (0x3ac), region = 185 }
 0x3a1   : > { %v1494_v38 = vadd.f32 %v1485_v61, %v1468_v44  ;;  %v1480_v26 = vpop.permute.xlu0 %1479 }
 0x3a2   : > { %1499 = vst [vmem:[#allocation2 + $0x8] sm:$0xff] %v1495_v42  ;;  %v1493_v45 = vadd.f32 %v1480_v26, %v1465_v56 }
 0x3a3   : > { %1498 = vst [vmem:[#allocation2 + $0x18] sm:$0xff] %v1494_v38 }
 0x3a4   : > { %1497 = vst [vmem:[#allocation2] sm:$0xff] %v1493_v45 }
 0x3a5   : > { %v1504_v0 = vld [vmem:[%s2133_s22] sm:$0xff]  ;;  %v1505_v2 = vld [vmem:[%s2133_s22 + $0x8] sm:$0xff]  ;;  %v1506_v4 = vld [vmem:[%s2133_s22 + $0x10] sm:$0xff] }
 0x3a6   : > { %v1508_v50 = vadd.f32 %v1504_v0, %v1492_v39  ;;  %v1509_v5 = vadd.f32 %v1505_v2, %v1493_v45  ;;  %v1510_v7 = vadd.f32 %v1506_v4, %v1494_v38  ;;  %v1507_v10 = vld [vmem:[%s2133_s22 + $0x18] sm:$0xff] }
 0x3a7   : > { %v1511_v8 = vadd.f32 %v1507_v10, %v1495_v42 }
 0x3a8   : > { %1512 = vst [vmem:[%s2139_s26] sm:$0xff] %v1508_v50 }
 0x3a9   : > { %1513 = vst [vmem:[%s2139_s26 + $0x8] sm:$0xff] %v1509_v5 }
 0x3aa   : > { %1514 = vst [vmem:[%s2139_s26 + $0x10] sm:$0xff] %v1510_v7 }
 0x3ab   : > { %1515 = vst [vmem:[%s2139_s26 + $0x18] sm:$0xff] %v1511_v8 }
 0x3ac PF: > { %s1750_s3 = sshll.u32 %s1950_s21, 3  ;;  %s1528_s0 = sshll.u32 %s2139_s26, 4  ;;  %s1529_s0 = int_to_ptr.vmem [resolvable:$true] %s1528_s0 }
 0x3ad   : > { %s1527_s12 = scalar_lea.hbm %s2535_s11, %s1750_s3  ;;  %s1517_s22 = scalar_lea.sflag [#allocation7], %s2128_s28 }
 0x3ae   : > { %s1530_s29 = sshll.u32 %s1527_s12, 4  ;;  %s1888_s21 = scalar_lea.hbm %s2535_s11, 64  ;;  %s1531_s29 = int_to_ptr.hbm [resolvable:$true] %s1530_s29 }
 0x3af   : > { %s1882_s15 = sshra.s32 %s1531_s29, 4  ;;  %s1883_s15 = int_to_ptr.hbm [resolvable:$true] %s1882_s15 }
 0x3b0   : > { %s1884_s13 = scalar_lea.hbm %s1883_s15, 32  ;;  %p1889_p6 = scmp.lt.s32.totalorder %s1883_s15, %s2535_s11 }
 0x3b1   : > { %p1885_p3 = scmp.ne.s32.totalorder %s1883_s15, %s1884_s13  ;;  %p1890_p8 = scmp.lt.s32.totalorder %s1888_s21, %s1884_s13 }
 0x3b3   : > { %p1886_p4 = pnand %p1885_p3, %p2087_p7  ;;  %p1891_p10 = por %p1890_p8, %p1889_p6 }
 0x3b5   : > { %p1887_p5 = pneg %p1886_p4 }
 0x3b7   : > { %p1892_p11 = pnand %p1891_p10, %p1887_p5 }
 0x3b9   : > { %1895 = shalt.err (!%p1892_p11)
}
 0x3ba   : > { %s1968_s28 = smov 128   ;;  %s1969_s26 = smov 256  }
 0x3bb   : > { %s1970_s27 = smov 8  }
 0x3bc   : > { %1767 = dma.vmem_to_hbm [thread:$0]  (%p2087_p7), %s1529_s0, 512, %s1531_s29, %s1517_s22, %s1968_s28, %s1969_s26, %s1970_s27  }
 0x3bd PF: > { %p1773_p12 = scmp.ge.s32.totalorder %s1962_s24, 2  ;;  %s1545_s20 = sand.u32 1, %s1934_s17  }
 0x3be   : > { %s1546_s25 = scalar_lea.sflag [#allocation7], %s1545_s20 }
 0x3bf   : > { %p1770_p13 = pnand %p1773_p12, %p2093_p9 }
 0x3c1   : > { %p1771_p0 = pneg %p1770_p13 }
 0x3c3   : > { %1929 = dma.done.wait (%p1771_p0), %s1546_s25, 512  }
 0x3c4   : > { %1931 = vsyncadd (%p1771_p0), %s1546_s25, 4294966784  ;;  %s24_s24 = sadd.s32 1, %s1962_s24   ;;  %s2556_s12 = sld [smem:[#allocation13_spill]] }
 0x3c5   : > { %p21_p1 = scmp.ge.s32.totalorder %s24_s24, 6   ;;  %s2557_s20 = sld [smem:[#allocation9_spill]] }
 0x3c6   : > { %s2558_s22 = sld [smem:[#allocation10_spill]]  ;;  %s2560_s17 = smov %s1938_s18 }
 0x3c7   : > { %s2559_s30 = sld [smem:[#allocation11_spill]]  ;;  %s2561_s18 = smov %s1942_s19 }
 0x3c8   : > { %s2563_s21 = smov %s1958_s23 }
 0x3c9   :  { %23 = sbr.rel (!%p21_p1) target bundleno = 10 (0xa), region = 249 }
 0x3ca   : > { %s2562_s19 = smov %s2556_s12 }
 0x3cd   : > { %s2564_s23 = smov %s2559_s30 }
 0x3ce   :  { %1552 = vsyncpa [#allocation7], 1 }
 0x3cf   :  { %1554 = vsyncpa [#allocation7 + $0x1], 1 }

</bundles_post_ra>
